<compile_context>
chip_gen: v7x
topology: tpu7x:2x2x1
jax: 0.10.0
libtpu: 0.0.40
codegen_flags: <defaults>
</compile_context>

<pallas_src>
import functools

import jax
import jax.numpy as jnp
from jax.experimental import pallas as pl
from jax.experimental.pallas import tpu as pltpu

LANE = 128


def _round_up(x, m):
    return (x + m - 1) // m * m


# ----------------------------------------------------------------------------
# Fused SimCLR kernel: one grid step per image.
#   x_ref : (1, H+2, (W+2)*C)   f32   spatially padded NHWC image, (W,C) merged
#   wc_ref: (9, W*C, W*C_out)   bf16  per-offset block-diagonal conv weights
#   bc_ref: (1, W*C_out)        f32   conv bias tiled over W
#   w1_ref: (H, W*C_out, Hd_pad) bf16 fc1 weights, rows permuted to (h, w, c_out)
#   b1_ref: (1, Hd_pad)         f32
#   w2_ref: (Hd_pad, P_pad)     bf16
#   b2_ref: (1, P_pad)          f32
#   o_ref : (1, 1, P_pad)       f32
# ----------------------------------------------------------------------------
def _simclr_fused_kernel(x_ref, wc_ref, bc_ref, w1_ref, b1_ref, w2_ref, b2_ref,
                         o_ref, *, hh, ww, c_in):
    lane_c = bc_ref.shape[1]          # W * C_out
    hd_pad = w1_ref.shape[2]

    # --- encoder: Conv3x3(pad=1) + bias + ReLU via 9 shifted matmuls ---------
    acc = jnp.zeros((hh, lane_c), jnp.float32)
    for kh in range(3):
        for kw in range(3):
            off = kh * 3 + kw
            # shifted view of the padded image row-block: (H, W*C_in)
            xs = x_ref[0, kh:kh + hh, kw * c_in:kw * c_in + ww * c_in]
            acc = acc + jnp.dot(xs.astype(jnp.bfloat16), wc_ref[off],
                                preferred_element_type=jnp.float32)
    feats = jnp.maximum(acc + bc_ref[...], 0.0)          # (H, W*C_out) f32

    # --- projection head fc1: contract all H*W*C_out features, one row-chunk
    #     of 128 lanes at a time (avoids any in-kernel reshape). --------------
    hacc = jnp.zeros((1, hd_pad), jnp.float32)
    for r in range(hh):
        row = feats[r:r + 1, :].astype(jnp.bfloat16)      # (1, W*C_out)
        hacc = hacc + jnp.dot(row, w1_ref[r], preferred_element_type=jnp.float32)
    hidden = jnp.maximum(hacc + b1_ref[...], 0.0).astype(jnp.bfloat16)

    # --- fc2 + bias ----------------------------------------------------------
    z = jnp.dot(hidden, w2_ref[...], preferred_element_type=jnp.float32) + b2_ref[...]
    o_ref[0] = z.astype(o_ref.dtype)


# ----------------------------------------------------------------------------
# SimCLR forward
# ----------------------------------------------------------------------------
def simclr_forward(x, kp, *, proj_dim):
    n, c, hh, ww = x.shape
    lane_c = kp["conv_w_big"].shape[2]            # W * C_out
    hd_pad = kp["fc1_w"].shape[2]
    p_pad = kp["fc2_w"].shape[1]

    # Tiny input prep (all ~10 KB): NCHW->NHWC, spatial 'same' pad, merge (W, C)
    # into the lane dim.  This is the only XLA work outside the fused kernel.
    x_nhwc = jnp.transpose(x, (0, 2, 3, 1))
    x_pad = jnp.pad(x_nhwc, ((0, 0), (1, 1), (1, 1), (0, 0)))
    x_flat = x_pad.reshape(n, hh + 2, (ww + 2) * c)

    flops = n * (2 * hh * (ww * c) * lane_c * 9          # conv (block-diag)
                 + 2 * hh * lane_c * hd_pad               # fc1
                 + 2 * hd_pad * p_pad)                    # fc2
    bytes_accessed = (4 * x_flat.size + 2 * kp["conv_w_big"].size
                      + 2 * kp["fc1_w"].size + 2 * kp["fc2_w"].size
                      + 4 * (kp["conv_b_big"].size + kp["fc1_b"].size + kp["fc2_b"].size)
                      + 4 * n * p_pad)

    kernel = functools.partial(_simclr_fused_kernel, hh=hh, ww=ww, c_in=c)
    out = pl.pallas_call(
        kernel,
        out_shape=jax.ShapeDtypeStruct((n, 1, p_pad), jnp.float32),
        grid_spec=pltpu.PrefetchScalarGridSpec(
            num_scalar_prefetch=0,
            grid=(n,),
            in_specs=[
                pl.BlockSpec((1, hh + 2, (ww + 2) * c), lambda i: (i, 0, 0)),
                pl.BlockSpec((9, ww * c, lane_c), lambda i: (0, 0, 0)),
                pl.BlockSpec((1, lane_c), lambda i: (0, 0)),
                pl.BlockSpec((hh, lane_c, hd_pad), lambda i: (0, 0, 0)),
                pl.BlockSpec((1, hd_pad), lambda i: (0, 0)),
                pl.BlockSpec((hd_pad, p_pad), lambda i: (0, 0)),
                pl.BlockSpec((1, p_pad), lambda i: (0, 0)),
            ],
            out_specs=pl.BlockSpec((1, 1, p_pad), lambda i: (i, 0, 0)),
        ),
        compiler_params=pltpu.CompilerParams(
            dimension_semantics=("parallel",)),
        cost_estimate=pl.CostEstimate(
            flops=flops, transcendentals=0, bytes_accessed=bytes_accessed),
    )(x_flat, kp["conv_w_big"], kp["conv_b_big"], kp["fc1_w"], kp["fc1_b"],
      kp["fc2_w"], kp["fc2_b"])

    # drop the zero-padded projection columns (free reshape + tiny slice)
    return out.reshape(n, p_pad)[:, :proj_dim]


# ----------------------------------------------------------------------------
# Params: PyTorch-layout init + one-time host-side repack into kernel layout
# ----------------------------------------------------------------------------
def init_params(key, c_in=4, c_out=8, h=16, w=16, hidden=32, proj=16):
    k = jax.random.split(key, 6)
    feat_dim = c_out * h * w
    scale = 0.05
    return {
        "conv_w": scale * jax.random.normal(k[0], (c_out, c_in, 3, 3), jnp.float32),
        "conv_b": scale * jax.random.normal(k[1], (c_out,), jnp.float32),
        "fc1_w": scale * jax.random.normal(k[2], (hidden, feat_dim), jnp.float32),
        "fc1_b": scale * jax.random.normal(k[3], (hidden,), jnp.float32),
        "fc2_w": scale * jax.random.normal(k[4], (proj, hidden), jnp.float32),
        "fc2_b": scale * jax.random.normal(k[5], (proj,), jnp.float32),
    }


def prepare_params(params, h, w):
    """One-time repack of PyTorch-layout params into fused-kernel layout."""
    conv_w = params["conv_w"]                                  # (C_out, C_in, 3, 3)
    c_out, c_in = conv_w.shape[0], conv_w.shape[1]
    hidden, feat_dim = params["fc1_w"].shape
    proj = params["fc2_w"].shape[0]
    assert feat_dim == c_out * h * w
    hd_pad = _round_up(hidden, LANE)
    p_pad = _round_up(proj, LANE)

    # Per-offset block-diagonal conv weights:
    #   w_big[kh*3+kw, w1*C_in + ci, w2*C_out + co] = (w1 == w2) * K[co, ci, kh, kw]
    w_off = jnp.transpose(conv_w, (2, 3, 1, 0)).reshape(9, c_in, c_out)
    eye_w = jnp.eye(w, dtype=conv_w.dtype)
    w_big = jnp.einsum("ab,oic->oaibc", eye_w, w_off)
    w_big = w_big.reshape(9, w * c_in, w * c_out).astype(jnp.bfloat16)
    b_big = jnp.tile(params["conv_b"], w).reshape(1, w * c_out)          # f32

    # fc1: torch computes feats_nchw_flat @ fc1_w.T; the kernel's features are laid
    # out as (h, w, c_out), so permute fc1_w rows accordingly and group per h-row;
    # pad hidden to 128 lanes (zeros) for lane-dense MXU passes.
    w1 = params["fc1_w"].reshape(hidden, c_out, h, w)                    # [j, co, h, w]
    w1 = jnp.transpose(w1, (2, 3, 1, 0)).reshape(h, w * c_out, hidden)   # [h, w*C_out+co, j]
    w1 = jnp.pad(w1, ((0, 0), (0, 0), (0, hd_pad - hidden))).astype(jnp.bfloat16)
    b1 = jnp.pad(params["fc1_b"], (0, hd_pad - hidden)).reshape(1, hd_pad)

    w2 = jnp.pad(params["fc2_w"].T,
                 ((0, hd_pad - hidden), (0, p_pad - proj))).astype(jnp.bfloat16)
    b2 = jnp.pad(params["fc2_b"], (0, p_pad - proj)).reshape(1, p_pad)

    return {"conv_w_big": w_big, "conv_b_big": b_big,
            "fc1_w": w1, "fc1_b": b1, "fc2_w": w2, "fc2_b": b2}


# ----------------------------------------------------------------------------
# Pure-JAX reference (torch semantics) for a correctness check
# ----------------------------------------------------------------------------
def reference_forward(x, params):
    out = jax.lax.conv_general_dilated(
        x, params["conv_w"], window_strides=(1, 1), padding="SAME",
        dimension_numbers=("NCHW", "OIHW", "NCHW"))
    out = jnp.maximum(out + params["conv_b"][None, :, None, None], 0.0)
    f = out.reshape(out.shape[0], -1)
    hdn = jnp.maximum(f @ params["fc1_w"].T + params["fc1_b"], 0.0)
    return hdn @ params["fc2_w"].T + params["fc2_b"]


if __name__ == "__main__":
    key = jax.random.PRNGKey(0)
    kx, kparam = jax.random.split(key)

    N, C, H, W = 2, 4, 16, 16
    x = jax.random.normal(kx, (N, C, H, W), jnp.float32)    # NCHW, like PyTorch
    params = init_params(kparam, c_in=C, c_out=8, h=H, w=W, hidden=32, proj=16)
    kparams = prepare_params(params, H, W)                  # one-time repack
    proj_dim = params["fc2_b"].shape[0]

    fwd = jax.jit(functools.partial(simclr_forward, proj_dim=proj_dim))
    out = jax.block_until_ready(fwd(x, kparams))
    assert out.shape == (N, proj_dim), out.shape

    ref = jax.block_until_ready(reference_forward(x, params))
    # bf16 MXU inputs with f32 accumulation -> loose-ish tolerance
    assert bool(jnp.allclose(out, ref, atol=2e-2, rtol=2e-2)), (
        float(jnp.max(jnp.abs(out - ref))))

    print("KERNEL_OK")
</pallas_src>

<mosaic_0001>
module attributes {stable_mosaic.version = 11 : i64} {
  func.func @_simclr_fused_kernel(%arg0: i32, %arg1: memref<1x18x72xf32, #tpu.memory_space<vmem>>, %arg2: memref<9x64x128xbf16, #tpu.memory_space<vmem>>, %arg3: memref<1x128xf32, #tpu.memory_space<vmem>>, %arg4: memref<16x128x128xbf16, #tpu.memory_space<vmem>>, %arg5: memref<1x128xf32, #tpu.memory_space<vmem>>, %arg6: memref<128x128xbf16, #tpu.memory_space<vmem>>, %arg7: memref<1x128xf32, #tpu.memory_space<vmem>>, %arg8: memref<1x1x128xf32, #tpu.memory_space<vmem>>) attributes {dimension_semantics = [#tpu.dimension_semantics<parallel>], iteration_bounds = array<i64: 2>, scalar_prefetch = 0 : i64, scratch_operands = 0 : i64, tpu.core_type = #tpu.core_type<tc>, window_params = [{transform_indices = @transform_0, window_bounds = array<i64: 1, 18, 72>}, {pipeline_mode = #tpu.pipeline_mode<synchronous>, transform_indices = @transform_1, window_bounds = array<i64: 9, 64, 128>}, {pipeline_mode = #tpu.pipeline_mode<synchronous>, transform_indices = @transform_2, window_bounds = array<i64: 1, 128>}, {pipeline_mode = #tpu.pipeline_mode<synchronous>, transform_indices = @transform_3, window_bounds = array<i64: 16, 128, 128>}, {pipeline_mode = #tpu.pipeline_mode<synchronous>, transform_indices = @transform_4, window_bounds = array<i64: 1, 128>}, {pipeline_mode = #tpu.pipeline_mode<synchronous>, transform_indices = @transform_5, window_bounds = array<i64: 128, 128>}, {pipeline_mode = #tpu.pipeline_mode<synchronous>, transform_indices = @transform_6, window_bounds = array<i64: 1, 128>}, {transform_indices = @transform_7, window_bounds = array<i64: 1, 1, 128>}]} {
    %cst = arith.constant 0.000000e+00 : f32
    %0 = vector.broadcast %cst : f32 to vector<16x128xf32>
    %c0 = arith.constant 0 : index
    %c0_0 = arith.constant 0 : index
    %c0_1 = arith.constant 0 : index
    %1 = vector.load %arg1[%c0, %c0_0, %c0_1] : memref<1x18x72xf32, #tpu.memory_space<vmem>>, vector<1x16x64xf32>
    %2 = vector.shape_cast %1 : vector<1x16x64xf32> to vector<16x64xf32>
    %3 = arith.truncf %2 : vector<16x64xf32> to vector<16x64xbf16>
    %c0_2 = arith.constant 0 : index
    %c0_3 = arith.constant 0 : index
    %c0_4 = arith.constant 0 : index
    %4 = vector.load %arg2[%c0_2, %c0_3, %c0_4] : memref<9x64x128xbf16, #tpu.memory_space<vmem>>, vector<1x64x128xbf16>
    %5 = vector.shape_cast %4 : vector<1x64x128xbf16> to vector<64x128xbf16>
    %cst_5 = arith.constant dense<0.000000e+00> : vector<16x128xf32>
    %6 = tpu.matmul %3, %5, %cst_5 {dimension_numbers = #tpu.dot_dimension_numbers<[1], [0], [0], [1], [0, 0, 1, 1], [], []>} : vector<16x64xbf16>, vector<64x128xbf16>, vector<16x128xf32> -> vector<16x128xf32>
    %7 = arith.addf %0, %6 : vector<16x128xf32>
    %c0_6 = arith.constant 0 : index
    %c0_7 = arith.constant 0 : index
    %c4 = arith.constant 4 : index
    %8 = vector.load %arg1[%c0_6, %c0_7, %c4] : memref<1x18x72xf32, #tpu.memory_space<vmem>>, vector<1x16x64xf32>
    %9 = vector.shape_cast %8 : vector<1x16x64xf32> to vector<16x64xf32>
    %10 = arith.truncf %9 : vector<16x64xf32> to vector<16x64xbf16>
    %c1 = arith.constant 1 : index
    %c0_8 = arith.constant 0 : index
    %c0_9 = arith.constant 0 : index
    %11 = vector.load %arg2[%c1, %c0_8, %c0_9] : memref<9x64x128xbf16, #tpu.memory_space<vmem>>, vector<1x64x128xbf16>
    %12 = vector.shape_cast %11 : vector<1x64x128xbf16> to vector<64x128xbf16>
    %cst_10 = arith.constant dense<0.000000e+00> : vector<16x128xf32>
    %13 = tpu.matmul %10, %12, %cst_10 {dimension_numbers = #tpu.dot_dimension_numbers<[1], [0], [0], [1], [0, 0, 1, 1], [], []>} : vector<16x64xbf16>, vector<64x128xbf16>, vector<16x128xf32> -> vector<16x128xf32>
    %14 = arith.addf %7, %13 : vector<16x128xf32>
    %c0_11 = arith.constant 0 : index
    %c0_12 = arith.constant 0 : index
    %c8 = arith.constant 8 : index
    %15 = vector.load %arg1[%c0_11, %c0_12, %c8] : memref<1x18x72xf32, #tpu.memory_space<vmem>>, vector<1x16x64xf32>
    %16 = vector.shape_cast %15 : vector<1x16x64xf32> to vector<16x64xf32>
    %17 = arith.truncf %16 : vector<16x64xf32> to vector<16x64xbf16>
    %c2 = arith.constant 2 : index
    %c0_13 = arith.constant 0 : index
    %c0_14 = arith.constant 0 : index
    %18 = vector.load %arg2[%c2, %c0_13, %c0_14] : memref<9x64x128xbf16, #tpu.memory_space<vmem>>, vector<1x64x128xbf16>
    %19 = vector.shape_cast %18 : vector<1x64x128xbf16> to vector<64x128xbf16>
    %cst_15 = arith.constant dense<0.000000e+00> : vector<16x128xf32>
    %20 = tpu.matmul %17, %19, %cst_15 {dimension_numbers = #tpu.dot_dimension_numbers<[1], [0], [0], [1], [0, 0, 1, 1], [], []>} : vector<16x64xbf16>, vector<64x128xbf16>, vector<16x128xf32> -> vector<16x128xf32>
    %21 = arith.addf %14, %20 : vector<16x128xf32>
    %c0_16 = arith.constant 0 : index
    %c1_17 = arith.constant 1 : index
    %c0_18 = arith.constant 0 : index
    %22 = vector.load %arg1[%c0_16, %c1_17, %c0_18] : memref<1x18x72xf32, #tpu.memory_space<vmem>>, vector<1x16x64xf32>
    %23 = vector.shape_cast %22 : vector<1x16x64xf32> to vector<16x64xf32>
    %24 = arith.truncf %23 : vector<16x64xf32> to vector<16x64xbf16>
    %c3 = arith.constant 3 : index
    %c0_19 = arith.constant 0 : index
    %c0_20 = arith.constant 0 : index
    %25 = vector.load %arg2[%c3, %c0_19, %c0_20] : memref<9x64x128xbf16, #tpu.memory_space<vmem>>, vector<1x64x128xbf16>
    %26 = vector.shape_cast %25 : vector<1x64x128xbf16> to vector<64x128xbf16>
    %cst_21 = arith.constant dense<0.000000e+00> : vector<16x128xf32>
    %27 = tpu.matmul %24, %26, %cst_21 {dimension_numbers = #tpu.dot_dimension_numbers<[1], [0], [0], [1], [0, 0, 1, 1], [], []>} : vector<16x64xbf16>, vector<64x128xbf16>, vector<16x128xf32> -> vector<16x128xf32>
    %28 = arith.addf %21, %27 : vector<16x128xf32>
    %c0_22 = arith.constant 0 : index
    %c1_23 = arith.constant 1 : index
    %c4_24 = arith.constant 4 : index
    %29 = vector.load %arg1[%c0_22, %c1_23, %c4_24] : memref<1x18x72xf32, #tpu.memory_space<vmem>>, vector<1x16x64xf32>
    %30 = vector.shape_cast %29 : vector<1x16x64xf32> to vector<16x64xf32>
    %31 = arith.truncf %30 : vector<16x64xf32> to vector<16x64xbf16>
    %c4_25 = arith.constant 4 : index
    %c0_26 = arith.constant 0 : index
    %c0_27 = arith.constant 0 : index
    %32 = vector.load %arg2[%c4_25, %c0_26, %c0_27] : memref<9x64x128xbf16, #tpu.memory_space<vmem>>, vector<1x64x128xbf16>
    %33 = vector.shape_cast %32 : vector<1x64x128xbf16> to vector<64x128xbf16>
    %cst_28 = arith.constant dense<0.000000e+00> : vector<16x128xf32>
    %34 = tpu.matmul %31, %33, %cst_28 {dimension_numbers = #tpu.dot_dimension_numbers<[1], [0], [0], [1], [0, 0, 1, 1], [], []>} : vector<16x64xbf16>, vector<64x128xbf16>, vector<16x128xf32> -> vector<16x128xf32>
    %35 = arith.addf %28, %34 : vector<16x128xf32>
    %c0_29 = arith.constant 0 : index
    %c1_30 = arith.constant 1 : index
    %c8_31 = arith.constant 8 : index
    %36 = vector.load %arg1[%c0_29, %c1_30, %c8_31] : memref<1x18x72xf32, #tpu.memory_space<vmem>>, vector<1x16x64xf32>
    %37 = vector.shape_cast %36 : vector<1x16x64xf32> to vector<16x64xf32>
    %38 = arith.truncf %37 : vector<16x64xf32> to vector<16x64xbf16>
    %c5 = arith.constant 5 : index
    %c0_32 = arith.constant 0 : index
    %c0_33 = arith.constant 0 : index
    %39 = vector.load %arg2[%c5, %c0_32, %c0_33] : memref<9x64x128xbf16, #tpu.memory_space<vmem>>, vector<1x64x128xbf16>
    %40 = vector.shape_cast %39 : vector<1x64x128xbf16> to vector<64x128xbf16>
    %cst_34 = arith.constant dense<0.000000e+00> : vector<16x128xf32>
    %41 = tpu.matmul %38, %40, %cst_34 {dimension_numbers = #tpu.dot_dimension_numbers<[1], [0], [0], [1], [0, 0, 1, 1], [], []>} : vector<16x64xbf16>, vector<64x128xbf16>, vector<16x128xf32> -> vector<16x128xf32>
    %42 = arith.addf %35, %41 : vector<16x128xf32>
    %c0_35 = arith.constant 0 : index
    %c2_36 = arith.constant 2 : index
    %c0_37 = arith.constant 0 : index
    %43 = vector.load %arg1[%c0_35, %c2_36, %c0_37] : memref<1x18x72xf32, #tpu.memory_space<vmem>>, vector<1x16x64xf32>
    %44 = vector.shape_cast %43 : vector<1x16x64xf32> to vector<16x64xf32>
    %45 = arith.truncf %44 : vector<16x64xf32> to vector<16x64xbf16>
    %c6 = arith.constant 6 : index
    %c0_38 = arith.constant 0 : index
    %c0_39 = arith.constant 0 : index
    %46 = vector.load %arg2[%c6, %c0_38, %c0_39] : memref<9x64x128xbf16, #tpu.memory_space<vmem>>, vector<1x64x128xbf16>
    %47 = vector.shape_cast %46 : vector<1x64x128xbf16> to vector<64x128xbf16>
    %cst_40 = arith.constant dense<0.000000e+00> : vector<16x128xf32>
    %48 = tpu.matmul %45, %47, %cst_40 {dimension_numbers = #tpu.dot_dimension_numbers<[1], [0], [0], [1], [0, 0, 1, 1], [], []>} : vector<16x64xbf16>, vector<64x128xbf16>, vector<16x128xf32> -> vector<16x128xf32>
    %49 = arith.addf %42, %48 : vector<16x128xf32>
    %c0_41 = arith.constant 0 : index
    %c2_42 = arith.constant 2 : index
    %c4_43 = arith.constant 4 : index
    %50 = vector.load %arg1[%c0_41, %c2_42, %c4_43] : memref<1x18x72xf32, #tpu.memory_space<vmem>>, vector<1x16x64xf32>
    %51 = vector.shape_cast %50 : vector<1x16x64xf32> to vector<16x64xf32>
    %52 = arith.truncf %51 : vector<16x64xf32> to vector<16x64xbf16>
    %c7 = arith.constant 7 : index
    %c0_44 = arith.constant 0 : index
    %c0_45 = arith.constant 0 : index
    %53 = vector.load %arg2[%c7, %c0_44, %c0_45] : memref<9x64x128xbf16, #tpu.memory_space<vmem>>, vector<1x64x128xbf16>
    %54 = vector.shape_cast %53 : vector<1x64x128xbf16> to vector<64x128xbf16>
    %cst_46 = arith.constant dense<0.000000e+00> : vector<16x128xf32>
    %55 = tpu.matmul %52, %54, %cst_46 {dimension_numbers = #tpu.dot_dimension_numbers<[1], [0], [0], [1], [0, 0, 1, 1], [], []>} : vector<16x64xbf16>, vector<64x128xbf16>, vector<16x128xf32> -> vector<16x128xf32>
    %56 = arith.addf %49, %55 : vector<16x128xf32>
    %c0_47 = arith.constant 0 : index
    %c2_48 = arith.constant 2 : index
    %c8_49 = arith.constant 8 : index
    %57 = vector.load %arg1[%c0_47, %c2_48, %c8_49] : memref<1x18x72xf32, #tpu.memory_space<vmem>>, vector<1x16x64xf32>
    %58 = vector.shape_cast %57 : vector<1x16x64xf32> to vector<16x64xf32>
    %59 = arith.truncf %58 : vector<16x64xf32> to vector<16x64xbf16>
    %c8_50 = arith.constant 8 : index
    %c0_51 = arith.constant 0 : index
    %c0_52 = arith.constant 0 : index
    %60 = vector.load %arg2[%c8_50, %c0_51, %c0_52] : memref<9x64x128xbf16, #tpu.memory_space<vmem>>, vector<1x64x128xbf16>
    %61 = vector.shape_cast %60 : vector<1x64x128xbf16> to vector<64x128xbf16>
    %cst_53 = arith.constant dense<0.000000e+00> : vector<16x128xf32>
    %62 = tpu.matmul %59, %61, %cst_53 {dimension_numbers = #tpu.dot_dimension_numbers<[1], [0], [0], [1], [0, 0, 1, 1], [], []>} : vector<16x64xbf16>, vector<64x128xbf16>, vector<16x128xf32> -> vector<16x128xf32>
    %63 = arith.addf %56, %62 : vector<16x128xf32>
    %c0_54 = arith.constant 0 : index
    %c0_55 = arith.constant 0 : index
    %64 = vector.load %arg3[%c0_54, %c0_55] : memref<1x128xf32, #tpu.memory_space<vmem>>, vector<1x128xf32>
    %65 = vector.broadcast %64 : vector<1x128xf32> to vector<16x128xf32>
    %66 = arith.addf %63, %65 : vector<16x128xf32>
    %cst_56 = arith.constant 0.000000e+00 : f32
    %67 = vector.broadcast %cst_56 : f32 to vector<16x128xf32>
    %68 = arith.maximumf %66, %67 : vector<16x128xf32>
    %cst_57 = arith.constant 0.000000e+00 : f32
    %69 = vector.broadcast %cst_57 : f32 to vector<1x128xf32>
    %70 = vector.extract_strided_slice %68 {offsets = [0, 0], sizes = [1, 128], strides = [1, 1]} : vector<16x128xf32> to vector<1x128xf32>
    %71 = arith.truncf %70 : vector<1x128xf32> to vector<1x128xbf16>
    %c0_58 = arith.constant 0 : index
    %c0_59 = arith.constant 0 : index
    %c0_60 = arith.constant 0 : index
    %72 = vector.load %arg4[%c0_58, %c0_59, %c0_60] : memref<16x128x128xbf16, #tpu.memory_space<vmem>>, vector<1x128x128xbf16>
    %73 = vector.shape_cast %72 : vector<1x128x128xbf16> to vector<128x128xbf16>
    %cst_61 = arith.constant dense<0.000000e+00> : vector<1x128xf32>
    %74 = tpu.matmul %71, %73, %cst_61 {dimension_numbers = #tpu.dot_dimension_numbers<[1], [0], [0], [1], [0, 0, 1, 1], [], []>} : vector<1x128xbf16>, vector<128x128xbf16>, vector<1x128xf32> -> vector<1x128xf32>
    %75 = arith.addf %69, %74 : vector<1x128xf32>
    %76 = vector.extract_strided_slice %68 {offsets = [1, 0], sizes = [1, 128], strides = [1, 1]} : vector<16x128xf32> to vector<1x128xf32>
    %77 = arith.truncf %76 : vector<1x128xf32> to vector<1x128xbf16>
    %c1_62 = arith.constant 1 : index
    %c0_63 = arith.constant 0 : index
    %c0_64 = arith.constant 0 : index
    %78 = vector.load %arg4[%c1_62, %c0_63, %c0_64] : memref<16x128x128xbf16, #tpu.memory_space<vmem>>, vector<1x128x128xbf16>
    %79 = vector.shape_cast %78 : vector<1x128x128xbf16> to vector<128x128xbf16>
    %cst_65 = arith.constant dense<0.000000e+00> : vector<1x128xf32>
    %80 = tpu.matmul %77, %79, %cst_65 {dimension_numbers = #tpu.dot_dimension_numbers<[1], [0], [0], [1], [0, 0, 1, 1], [], []>} : vector<1x128xbf16>, vector<128x128xbf16>, vector<1x128xf32> -> vector<1x128xf32>
    %81 = arith.addf %75, %80 : vector<1x128xf32>
    %82 = vector.extract_strided_slice %68 {offsets = [2, 0], sizes = [1, 128], strides = [1, 1]} : vector<16x128xf32> to vector<1x128xf32>
    %83 = arith.truncf %82 : vector<1x128xf32> to vector<1x128xbf16>
    %c2_66 = arith.constant 2 : index
    %c0_67 = arith.constant 0 : index
    %c0_68 = arith.constant 0 : index
    %84 = vector.load %arg4[%c2_66, %c0_67, %c0_68] : memref<16x128x128xbf16, #tpu.memory_space<vmem>>, vector<1x128x128xbf16>
    %85 = vector.shape_cast %84 : vector<1x128x128xbf16> to vector<128x128xbf16>
    %cst_69 = arith.constant dense<0.000000e+00> : vector<1x128xf32>
    %86 = tpu.matmul %83, %85, %cst_69 {dimension_numbers = #tpu.dot_dimension_numbers<[1], [0], [0], [1], [0, 0, 1, 1], [], []>} : vector<1x128xbf16>, vector<128x128xbf16>, vector<1x128xf32> -> vector<1x128xf32>
    %87 = arith.addf %81, %86 : vector<1x128xf32>
    %88 = vector.extract_strided_slice %68 {offsets = [3, 0], sizes = [1, 128], strides = [1, 1]} : vector<16x128xf32> to vector<1x128xf32>
    %89 = arith.truncf %88 : vector<1x128xf32> to vector<1x128xbf16>
    %c3_70 = arith.constant 3 : index
    %c0_71 = arith.constant 0 : index
    %c0_72 = arith.constant 0 : index
    %90 = vector.load %arg4[%c3_70, %c0_71, %c0_72] : memref<16x128x128xbf16, #tpu.memory_space<vmem>>, vector<1x128x128xbf16>
    %91 = vector.shape_cast %90 : vector<1x128x128xbf16> to vector<128x128xbf16>
    %cst_73 = arith.constant dense<0.000000e+00> : vector<1x128xf32>
    %92 = tpu.matmul %89, %91, %cst_73 {dimension_numbers = #tpu.dot_dimension_numbers<[1], [0], [0], [1], [0, 0, 1, 1], [], []>} : vector<1x128xbf16>, vector<128x128xbf16>, vector<1x128xf32> -> vector<1x128xf32>
    %93 = arith.addf %87, %92 : vector<1x128xf32>
    %94 = vector.extract_strided_slice %68 {offsets = [4, 0], sizes = [1, 128], strides = [1, 1]} : vector<16x128xf32> to vector<1x128xf32>
    %95 = arith.truncf %94 : vector<1x128xf32> to vector<1x128xbf16>
    %c4_74 = arith.constant 4 : index
    %c0_75 = arith.constant 0 : index
    %c0_76 = arith.constant 0 : index
    %96 = vector.load %arg4[%c4_74, %c0_75, %c0_76] : memref<16x128x128xbf16, #tpu.memory_space<vmem>>, vector<1x128x128xbf16>
    %97 = vector.shape_cast %96 : vector<1x128x128xbf16> to vector<128x128xbf16>
    %cst_77 = arith.constant dense<0.000000e+00> : vector<1x128xf32>
    %98 = tpu.matmul %95, %97, %cst_77 {dimension_numbers = #tpu.dot_dimension_numbers<[1], [0], [0], [1], [0, 0, 1, 1], [], []>} : vector<1x128xbf16>, vector<128x128xbf16>, vector<1x128xf32> -> vector<1x128xf32>
    %99 = arith.addf %93, %98 : vector<1x128xf32>
    %100 = vector.extract_strided_slice %68 {offsets = [5, 0], sizes = [1, 128], strides = [1, 1]} : vector<16x128xf32> to vector<1x128xf32>
    %101 = arith.truncf %100 : vector<1x128xf32> to vector<1x128xbf16>
    %c5_78 = arith.constant 5 : index
    %c0_79 = arith.constant 0 : index
    %c0_80 = arith.constant 0 : index
    %102 = vector.load %arg4[%c5_78, %c0_79, %c0_80] : memref<16x128x128xbf16, #tpu.memory_space<vmem>>, vector<1x128x128xbf16>
    %103 = vector.shape_cast %102 : vector<1x128x128xbf16> to vector<128x128xbf16>
    %cst_81 = arith.constant dense<0.000000e+00> : vector<1x128xf32>
    %104 = tpu.matmul %101, %103, %cst_81 {dimension_numbers = #tpu.dot_dimension_numbers<[1], [0], [0], [1], [0, 0, 1, 1], [], []>} : vector<1x128xbf16>, vector<128x128xbf16>, vector<1x128xf32> -> vector<1x128xf32>
    %105 = arith.addf %99, %104 : vector<1x128xf32>
    %106 = vector.extract_strided_slice %68 {offsets = [6, 0], sizes = [1, 128], strides = [1, 1]} : vector<16x128xf32> to vector<1x128xf32>
    %107 = arith.truncf %106 : vector<1x128xf32> to vector<1x128xbf16>
    %c6_82 = arith.constant 6 : index
    %c0_83 = arith.constant 0 : index
    %c0_84 = arith.constant 0 : index
    %108 = vector.load %arg4[%c6_82, %c0_83, %c0_84] : memref<16x128x128xbf16, #tpu.memory_space<vmem>>, vector<1x128x128xbf16>
    %109 = vector.shape_cast %108 : vector<1x128x128xbf16> to vector<128x128xbf16>
    %cst_85 = arith.constant dense<0.000000e+00> : vector<1x128xf32>
    %110 = tpu.matmul %107, %109, %cst_85 {dimension_numbers = #tpu.dot_dimension_numbers<[1], [0], [0], [1], [0, 0, 1, 1], [], []>} : vector<1x128xbf16>, vector<128x128xbf16>, vector<1x128xf32> -> vector<1x128xf32>
    %111 = arith.addf %105, %110 : vector<1x128xf32>
    %112 = vector.extract_strided_slice %68 {offsets = [7, 0], sizes = [1, 128], strides = [1, 1]} : vector<16x128xf32> to vector<1x128xf32>
    %113 = arith.truncf %112 : vector<1x128xf32> to vector<1x128xbf16>
    %c7_86 = arith.constant 7 : index
    %c0_87 = arith.constant 0 : index
    %c0_88 = arith.constant 0 : index
    %114 = vector.load %arg4[%c7_86, %c0_87, %c0_88] : memref<16x128x128xbf16, #tpu.memory_space<vmem>>, vector<1x128x128xbf16>
    %115 = vector.shape_cast %114 : vector<1x128x128xbf16> to vector<128x128xbf16>
    %cst_89 = arith.constant dense<0.000000e+00> : vector<1x128xf32>
    %116 = tpu.matmul %113, %115, %cst_89 {dimension_numbers = #tpu.dot_dimension_numbers<[1], [0], [0], [1], [0, 0, 1, 1], [], []>} : vector<1x128xbf16>, vector<128x128xbf16>, vector<1x128xf32> -> vector<1x128xf32>
    %117 = arith.addf %111, %116 : vector<1x128xf32>
    %118 = vector.extract_strided_slice %68 {offsets = [8, 0], sizes = [1, 128], strides = [1, 1]} : vector<16x128xf32> to vector<1x128xf32>
    %119 = arith.truncf %118 : vector<1x128xf32> to vector<1x128xbf16>
    %c8_90 = arith.constant 8 : index
    %c0_91 = arith.constant 0 : index
    %c0_92 = arith.constant 0 : index
    %120 = vector.load %arg4[%c8_90, %c0_91, %c0_92] : memref<16x128x128xbf16, #tpu.memory_space<vmem>>, vector<1x128x128xbf16>
    %121 = vector.shape_cast %120 : vector<1x128x128xbf16> to vector<128x128xbf16>
    %cst_93 = arith.constant dense<0.000000e+00> : vector<1x128xf32>
    %122 = tpu.matmul %119, %121, %cst_93 {dimension_numbers = #tpu.dot_dimension_numbers<[1], [0], [0], [1], [0, 0, 1, 1], [], []>} : vector<1x128xbf16>, vector<128x128xbf16>, vector<1x128xf32> -> vector<1x128xf32>
    %123 = arith.addf %117, %122 : vector<1x128xf32>
    %124 = vector.extract_strided_slice %68 {offsets = [9, 0], sizes = [1, 128], strides = [1, 1]} : vector<16x128xf32> to vector<1x128xf32>
    %125 = arith.truncf %124 : vector<1x128xf32> to vector<1x128xbf16>
    %c9 = arith.constant 9 : index
    %c0_94 = arith.constant 0 : index
    %c0_95 = arith.constant 0 : index
    %126 = vector.load %arg4[%c9, %c0_94, %c0_95] : memref<16x128x128xbf16, #tpu.memory_space<vmem>>, vector<1x128x128xbf16>
    %127 = vector.shape_cast %126 : vector<1x128x128xbf16> to vector<128x128xbf16>
    %cst_96 = arith.constant dense<0.000000e+00> : vector<1x128xf32>
    %128 = tpu.matmul %125, %127, %cst_96 {dimension_numbers = #tpu.dot_dimension_numbers<[1], [0], [0], [1], [0, 0, 1, 1], [], []>} : vector<1x128xbf16>, vector<128x128xbf16>, vector<1x128xf32> -> vector<1x128xf32>
    %129 = arith.addf %123, %128 : vector<1x128xf32>
    %130 = vector.extract_strided_slice %68 {offsets = [10, 0], sizes = [1, 128], strides = [1, 1]} : vector<16x128xf32> to vector<1x128xf32>
    %131 = arith.truncf %130 : vector<1x128xf32> to vector<1x128xbf16>
    %c10 = arith.constant 10 : index
    %c0_97 = arith.constant 0 : index
    %c0_98 = arith.constant 0 : index
    %132 = vector.load %arg4[%c10, %c0_97, %c0_98] : memref<16x128x128xbf16, #tpu.memory_space<vmem>>, vector<1x128x128xbf16>
    %133 = vector.shape_cast %132 : vector<1x128x128xbf16> to vector<128x128xbf16>
    %cst_99 = arith.constant dense<0.000000e+00> : vector<1x128xf32>
    %134 = tpu.matmul %131, %133, %cst_99 {dimension_numbers = #tpu.dot_dimension_numbers<[1], [0], [0], [1], [0, 0, 1, 1], [], []>} : vector<1x128xbf16>, vector<128x128xbf16>, vector<1x128xf32> -> vector<1x128xf32>
    %135 = arith.addf %129, %134 : vector<1x128xf32>
    %136 = vector.extract_strided_slice %68 {offsets = [11, 0], sizes = [1, 128], strides = [1, 1]} : vector<16x128xf32> to vector<1x128xf32>
    %137 = arith.truncf %136 : vector<1x128xf32> to vector<1x128xbf16>
    %c11 = arith.constant 11 : index
    %c0_100 = arith.constant 0 : index
    %c0_101 = arith.constant 0 : index
    %138 = vector.load %arg4[%c11, %c0_100, %c0_101] : memref<16x128x128xbf16, #tpu.memory_space<vmem>>, vector<1x128x128xbf16>
    %139 = vector.shape_cast %138 : vector<1x128x128xbf16> to vector<128x128xbf16>
    %cst_102 = arith.constant dense<0.000000e+00> : vector<1x128xf32>
    %140 = tpu.matmul %137, %139, %cst_102 {dimension_numbers = #tpu.dot_dimension_numbers<[1], [0], [0], [1], [0, 0, 1, 1], [], []>} : vector<1x128xbf16>, vector<128x128xbf16>, vector<1x128xf32> -> vector<1x128xf32>
    %141 = arith.addf %135, %140 : vector<1x128xf32>
    %142 = vector.extract_strided_slice %68 {offsets = [12, 0], sizes = [1, 128], strides = [1, 1]} : vector<16x128xf32> to vector<1x128xf32>
    %143 = arith.truncf %142 : vector<1x128xf32> to vector<1x128xbf16>
    %c12 = arith.constant 12 : index
    %c0_103 = arith.constant 0 : index
    %c0_104 = arith.constant 0 : index
    %144 = vector.load %arg4[%c12, %c0_103, %c0_104] : memref<16x128x128xbf16, #tpu.memory_space<vmem>>, vector<1x128x128xbf16>
    %145 = vector.shape_cast %144 : vector<1x128x128xbf16> to vector<128x128xbf16>
    %cst_105 = arith.constant dense<0.000000e+00> : vector<1x128xf32>
    %146 = tpu.matmul %143, %145, %cst_105 {dimension_numbers = #tpu.dot_dimension_numbers<[1], [0], [0], [1], [0, 0, 1, 1], [], []>} : vector<1x128xbf16>, vector<128x128xbf16>, vector<1x128xf32> -> vector<1x128xf32>
    %147 = arith.addf %141, %146 : vector<1x128xf32>
    %148 = vector.extract_strided_slice %68 {offsets = [13, 0], sizes = [1, 128], strides = [1, 1]} : vector<16x128xf32> to vector<1x128xf32>
    %149 = arith.truncf %148 : vector<1x128xf32> to vector<1x128xbf16>
    %c13 = arith.constant 13 : index
    %c0_106 = arith.constant 0 : index
    %c0_107 = arith.constant 0 : index
    %150 = vector.load %arg4[%c13, %c0_106, %c0_107] : memref<16x128x128xbf16, #tpu.memory_space<vmem>>, vector<1x128x128xbf16>
    %151 = vector.shape_cast %150 : vector<1x128x128xbf16> to vector<128x128xbf16>
    %cst_108 = arith.constant dense<0.000000e+00> : vector<1x128xf32>
    %152 = tpu.matmul %149, %151, %cst_108 {dimension_numbers = #tpu.dot_dimension_numbers<[1], [0], [0], [1], [0, 0, 1, 1], [], []>} : vector<1x128xbf16>, vector<128x128xbf16>, vector<1x128xf32> -> vector<1x128xf32>
    %153 = arith.addf %147, %152 : vector<1x128xf32>
    %154 = vector.extract_strided_slice %68 {offsets = [14, 0], sizes = [1, 128], strides = [1, 1]} : vector<16x128xf32> to vector<1x128xf32>
    %155 = arith.truncf %154 : vector<1x128xf32> to vector<1x128xbf16>
    %c14 = arith.constant 14 : index
    %c0_109 = arith.constant 0 : index
    %c0_110 = arith.constant 0 : index
    %156 = vector.load %arg4[%c14, %c0_109, %c0_110] : memref<16x128x128xbf16, #tpu.memory_space<vmem>>, vector<1x128x128xbf16>
    %157 = vector.shape_cast %156 : vector<1x128x128xbf16> to vector<128x128xbf16>
    %cst_111 = arith.constant dense<0.000000e+00> : vector<1x128xf32>
    %158 = tpu.matmul %155, %157, %cst_111 {dimension_numbers = #tpu.dot_dimension_numbers<[1], [0], [0], [1], [0, 0, 1, 1], [], []>} : vector<1x128xbf16>, vector<128x128xbf16>, vector<1x128xf32> -> vector<1x128xf32>
    %159 = arith.addf %153, %158 : vector<1x128xf32>
    %160 = vector.extract_strided_slice %68 {offsets = [15, 0], sizes = [1, 128], strides = [1, 1]} : vector<16x128xf32> to vector<1x128xf32>
    %161 = arith.truncf %160 : vector<1x128xf32> to vector<1x128xbf16>
    %c15 = arith.constant 15 : index
    %c0_112 = arith.constant 0 : index
    %c0_113 = arith.constant 0 : index
    %162 = vector.load %arg4[%c15, %c0_112, %c0_113] : memref<16x128x128xbf16, #tpu.memory_space<vmem>>, vector<1x128x128xbf16>
    %163 = vector.shape_cast %162 : vector<1x128x128xbf16> to vector<128x128xbf16>
    %cst_114 = arith.constant dense<0.000000e+00> : vector<1x128xf32>
    %164 = tpu.matmul %161, %163, %cst_114 {dimension_numbers = #tpu.dot_dimension_numbers<[1], [0], [0], [1], [0, 0, 1, 1], [], []>} : vector<1x128xbf16>, vector<128x128xbf16>, vector<1x128xf32> -> vector<1x128xf32>
    %165 = arith.addf %159, %164 : vector<1x128xf32>
    %c0_115 = arith.constant 0 : index
    %c0_116 = arith.constant 0 : index
    %166 = vector.load %arg5[%c0_115, %c0_116] : memref<1x128xf32, #tpu.memory_space<vmem>>, vector<1x128xf32>
    %167 = arith.addf %165, %166 : vector<1x128xf32>
    %cst_117 = arith.constant 0.000000e+00 : f32
    %168 = vector.broadcast %cst_117 : f32 to vector<1x128xf32>
    %169 = arith.maximumf %167, %168 : vector<1x128xf32>
    %170 = arith.truncf %169 : vector<1x128xf32> to vector<1x128xbf16>
    %c0_118 = arith.constant 0 : index
    %c0_119 = arith.constant 0 : index
    %171 = vector.load %arg6[%c0_118, %c0_119] : memref<128x128xbf16, #tpu.memory_space<vmem>>, vector<128x128xbf16>
    %cst_120 = arith.constant dense<0.000000e+00> : vector<1x128xf32>
    %172 = tpu.matmul %170, %171, %cst_120 {dimension_numbers = #tpu.dot_dimension_numbers<[1], [0], [0], [1], [0, 0, 1, 1], [], []>} : vector<1x128xbf16>, vector<128x128xbf16>, vector<1x128xf32> -> vector<1x128xf32>
    %c0_121 = arith.constant 0 : index
    %c0_122 = arith.constant 0 : index
    %173 = vector.load %arg7[%c0_121, %c0_122] : memref<1x128xf32, #tpu.memory_space<vmem>>, vector<1x128xf32>
    %174 = arith.addf %172, %173 : vector<1x128xf32>
    %c0_123 = arith.constant 0 : index
    %c0_124 = arith.constant 0 : index
    %c0_125 = arith.constant 0 : index
    %175 = vector.load %arg8[%c0_123, %c0_124, %c0_125] : memref<1x1x128xf32, #tpu.memory_space<vmem>>, vector<1x1x128xf32>
    %176 = vector.shape_cast %175 : vector<1x1x128xf32> to vector<1x128xf32>
    %177 = vector.shape_cast %174 : vector<1x128xf32> to vector<1x1x128xf32>
    tpu.vector_store %arg8[%c0_123, %c0_124, %c0_125], %177 {strides = array<i32>} : memref<1x1x128xf32, #tpu.memory_space<vmem>>, vector<1x1x128xf32>,
    return
  }
  func.func @transform_0(%arg0: i32) -> (i32, i32, i32) {
    %c0_i32 = arith.constant 0 : i32
    %c0_i32_0 = arith.constant 0 : i32
    %c0_i32_1 = arith.constant 0 : i32
    return %arg0, %c0_i32, %c0_i32_0 : i32, i32, i32
  }
  func.func @transform_1(%arg0: i32) -> (i32, i32, i32) {
    %c0_i32 = arith.constant 0 : i32
    %c0_i32_0 = arith.constant 0 : i32
    %c0_i32_1 = arith.constant 0 : i32
    %c0_i32_2 = arith.constant 0 : i32
    return %c0_i32, %c0_i32_0, %c0_i32_1 : i32, i32, i32
  }
  func.func @transform_2(%arg0: i32) -> (i32, i32) {
    %c0_i32 = arith.constant 0 : i32
    %c0_i32_0 = arith.constant 0 : i32
    %c0_i32_1 = arith.constant 0 : i32
    return %c0_i32, %c0_i32_0 : i32, i32
  }
  func.func @transform_3(%arg0: i32) -> (i32, i32, i32) {
    %c0_i32 = arith.constant 0 : i32
    %c0_i32_0 = arith.constant 0 : i32
    %c0_i32_1 = arith.constant 0 : i32
    %c0_i32_2 = arith.constant 0 : i32
    return %c0_i32, %c0_i32_0, %c0_i32_1 : i32, i32, i32
  }
  func.func @transform_4(%arg0: i32) -> (i32, i32) {
    %c0_i32 = arith.constant 0 : i32
    %c0_i32_0 = arith.constant 0 : i32
    %c0_i32_1 = arith.constant 0 : i32
    return %c0_i32, %c0_i32_0 : i32, i32
  }
  func.func @transform_5(%arg0: i32) -> (i32, i32) {
    %c0_i32 = arith.constant 0 : i32
    %c0_i32_0 = arith.constant 0 : i32
    %c0_i32_1 = arith.constant 0 : i32
    return %c0_i32, %c0_i32_0 : i32, i32
  }
  func.func @transform_6(%arg0: i32) -> (i32, i32) {
    %c0_i32 = arith.constant 0 : i32
    %c0_i32_0 = arith.constant 0 : i32
    %c0_i32_1 = arith.constant 0 : i32
    return %c0_i32, %c0_i32_0 : i32, i32
  }
  func.func @transform_7(%arg0: i32) -> (i32, i32, i32) {
    %c0_i32 = arith.constant 0 : i32
    %c0_i32_0 = arith.constant 0 : i32
    %c0_i32_1 = arith.constant 0 : i32
    return %arg0, %c0_i32, %c0_i32_0 : i32, i32, i32
  }
}

</mosaic_0001>

<bundles_post_ra>
// kernel: simclr_forward.1
= control target key start
LH: loop header
LB: loop body
LE: loop exit
PB: predicated region body
PF: predicated region fallthrough
CT: control target
= control target key end

     0   :  { %12 = vsyncpa [#allocation3], 0  ;;  %s4771_s0 = inlined_call_operand.vmem [shape: f32[2,18,72], index: 0, kind: input, shape index: {}]   ;;  %s4772_s1 = inlined_call_operand.vmem [shape: bf16[9,64,128], index: 1, kind: input, shape index: {}]   ;;  %s4773_s2 = inlined_call_operand.vmem [shape: f32[1,128], index: 2, kind: input, shape index: {}]   ;;  %s4774_s3 = inlined_call_operand.hbm [shape: bf16[16,128,128], index: 3, kind: input, shape index: {}]   ;;  %s4775_s4 = inlined_call_operand.vmem [shape: f32[1,128], index: 4, kind: input, shape index: {}]   ;;  %s4776_s5 = inlined_call_operand.vmem [shape: bf16[128,128], index: 5, kind: input, shape index: {}]   ;;  %s4777_s6 = inlined_call_operand.vmem [shape: f32[1,128], index: 6, kind: input, shape index: {}]   ;;  %s4778_s7 = inlined_call_operand.hbm [shape: f32[2,1,128], index: 7, kind: output, shape index: {}]  }
   0x1   :  { %13 = vsyncpa [#allocation4], 0 }
   0x2   :  { %15 = vsyncpa [#allocation4 + $0x1], 0  ;;  %s4228_s24 = smov 0   ;;  %s4230_s25 = smov 0  }
   0x3   :  { %s4232_s26 = smov 0   ;;  %s4234_s27 = smov 0  }
   0x4 LB: > { %s4249_s28 = sadd.s32 4294967295, %s4178_s27   ;;  %s2953_s29 = sadd.s32 4294967294, %s4178_s27   ;;  %s4178_s27 = sphi %s4234_s27, %s4794_s27   ;;  %s4174_s26 = sphi %s4232_s26, %s4793_s26   ;;  %s4170_s25 = sphi %s4230_s25, %s4792_s25   ;;  %s4166_s24 = sphi %s4228_s24, %s4791_s24  }
   0x5   : > { %s4253_s30 = sadd.s32 1, %s4178_s27   ;;  %s180_s8 = sadd.s32 1, %s4174_s26 }
   0x6   : > { %s177_s9 = ssub.s32 %s4178_s27, %s4253_s30  ;;  %p190_p0 = scmp.ne.s32.totalorder %s4174_s26, %s4170_s25 }
   0x7   : > { %p178_p1 = scmp.eq.s32.totalorder %s177_s9, 0  ;;  %p191_p2 = scmp.eq.s32.totalorder %s4249_s28, 1 }
   0x8   : > { %p196_p3 = scmp.ne.s32.totalorder %s4170_s25, %s4166_s24  ;;  %p197_p4 = scmp.eq.s32.totalorder %s2953_s29, 1 }
   0x9   : > { %s4264_s10 = scalar_select %p178_p1, %s4174_s26, %s180_s8  }
   0xa   : > { %p4266_p5 = por %p191_p2, %p190_p0  ;;  %p4270_p6 = por %p197_p4, %p196_p3 }
   0xb   : > { %p2954_p7 = scmp.ge.s32.totalorder %s4178_s27, 1  ;;  %p204_p8 = scmp.lt.s32.totalorder %s4178_s27, 3 }
   0xc   : > { %s4782_s11 = scalar_select %p4266_p5, 1, 0 }
   0xd   : > { %s4783_s12 = scalar_select %p4270_p6, 1, 0 }
   0xe   : > { %p4779_p9 = scmp.eq.s32.totalorder %s4249_s28, 0  ;;  %p4277_p10 = pnand %p2954_p7, %p204_p8 }
   0xf   : > { %s4180_s14 = smov [#allocation2]   ;;  %s4084_s19 = scalar_lea.hbm %s4774_s3, 16384 }
  0x10   : > { %s4784_s13 = scalar_select %p4277_p10, 1, 0 }
  0x11   : > { %s222_s15 = sshll.u32 %s4180_s14, 4  ;;  %p3862_p11 = pneg %p4277_p10  ;;  %s223_s15 = int_to_ptr.vmem [resolvable:$true] %s222_s15 }
  0x12   : > { %p4085_p13 = scmp.ne.s32.totalorder %s4774_s3, %s4084_s19  ;;  %p4091_p3 = scmp.lt.u32.totalorder %s4084_s19, %s4774_s3 }
  0x13   : > { %p4285_p12 = pnand %p4779_p9, %p3862_p11 }
  0x15   : > { %p4086_p0 = pneg %p4285_p12 }
  0x17   : > { %p4087_p1 = pnand %p4086_p0, %p4085_p13 }
  0x19   : > { %p4088_p2 = pneg %p4087_p1 }
  0x1b   : > { %p4093_p4 = pnand %p4091_p3, %p4088_p2 }
  0x1d   : > { %4096 = shalt.err (!%p4093_p4)
}
  0x1e   : > { %s4097_s29 = scalar_lea.vmem %s223_s15, 16384  ;;  %p4105_p9 = scmp.lt.s32.totalorder %s223_s15, %s223_s15 }
  0x1f   : > { %p4098_p7 = scmp.ne.s32.totalorder %s223_s15, %s4097_s29  ;;  %p4106_p6 = scmp.lt.s32.totalorder %s4097_s29, %s4097_s29 }
  0x21   : > { %p4100_p8 = pnand %p4098_p7, %p4086_p0  ;;  %p4107_p5 = por %p4106_p6, %p4105_p9 }
  0x23   : > { %p4101_p11 = pneg %p4100_p8 }
  0x25   : > { %p4108_p10 = pnand %p4107_p5, %p4101_p11 }
  0x27   : > { %4111 = shalt.err (!%p4108_p10)
}
  0x28   : > { %s4181_s8 = smov 64   ;;  %s4182_s9 = smov 4  }
  0x29   : > { %3865 = dma.hbm_to_vmem [thread:$0]  (!%p4285_p12), %s4774_s3, 16384, %s223_s15, [#allocation3], %s4181_s8, %s4181_s8, %s4182_s9  }
  0x2a   : > { %p4786_p13 = scmp.ne.s32.totalorder %s4784_s13, 0 }
  0x2b   : > { %p4787_p1 = scmp.eq.s32.totalorder (!%p4786_p13), %s4249_s28, 0 }
  0x2c   : > { %255 = sbr.rel (%p4786_p13) target bundleno = 1137 (0x471), region = 48 }
  0x33   : > { %4157 = dma.done.wait (%p4787_p1), [#allocation3], 16384   ;;  %p4788_p0 = pmov %p4787_p1 }
  0x34   : > { %p286_p5 = scmp.lt.s32.totalorder %s4249_s28, 1  ;;  %v4183_v0 = vmov 0.0   ;;  %vm4184_vm0 = vmmov 0   ;;  %v3912_v9 = vld [vmem:[%s4772_s1 + $0x20] sm:$0xff]   ;;  %s4185_s22 = smov 124   ;;  %v3914_v11 = vld [vmem:[%s4772_s1 + $0x28] sm:$0xff]  }
  0x35   : > { %4159 = vsyncadd (%p4788_p0), [#allocation3], 4294950912  ;;  %3407 = vmatprep.subr.bf16.mxu0 %v4183_v0  ;;  %3419 = vmatprep.subr.bf16.mxu1 %v4183_v0  ;;  %v3913_v10 = vld [vmem:[%s4772_s1] sm:$0xff]   ;;  %v3915_v12 = vld [vmem:[%s4772_s1 + $0x8] sm:$0xff]   ;;  %vm339_vm1 = vcmask 523264   ;;  %p4789_p9 = scmp.ne.s32.totalorder %s4782_s11, 0 }
  0x36   : > { %s287_s16 = scalar_select %p286_p5, %s4249_s28, 1  ;;  %3415 = vmatprep.mubr.msk.bf16.mxu0 %vm4184_vm0, %v4183_v0  ;;  %3427 = vmatprep.mubr.msk.bf16.mxu1 %vm4184_vm0, %v4183_v0  ;;  %v3916_v14 = vld [vmem:[%s4772_s1 + $0x30] sm:$0xff]   ;;  %v3918_v16 = vld [vmem:[%s4772_s1 + $0x38] sm:$0xff]   ;;  %v3921_v18 = vld [vmem:[%s4772_s1 + $0x60] sm:$0xff]  }
  0x37   : > { %3408 = vmatpush3.bf16.msra.mxu0 %v3912_v9  ;;  %3420 = vmatpush3.bf16.msra.mxu1 %v3913_v10  ;;  %v3917_v15 = vld [vmem:[%s4772_s1 + $0x10] sm:$0xff]   ;;  %v3919_v17 = vld [vmem:[%s4772_s1 + $0x18] sm:$0xff]   ;;  %v3923_v19 = vld [vmem:[%s4772_s1 + $0x68] sm:$0xff]   ;;  %s4187_s9 = smov [#allocation5]  }
  0x38   : > { %s3855_s13 = smul.u32 24, %s287_s16  ;;  %3409 = vmatprep.subr.bf16.mxu0 %v4183_v0  ;;  %3421 = vmatprep.subr.bf16.mxu1 %v4183_v0  ;;  %s4186_s16 = smov 120   ;;  %v3925_v20 = vld [vmem:[%s4772_s1 + $0x70] sm:$0xff]   ;;  %v3927_v21 = vld [vmem:[%s4772_s1 + $0x78] sm:$0xff]   ;;  %v3929_v22 = vld [vmem:[%s4772_s1 + $0xa0] sm:$0xff]  }
  0x39   : > { %v3931_v23 = vld [vmem:[%s4772_s1 + $0xa8] sm:$0xff]   ;;  %v3933_v24 = vld [vmem:[%s4772_s1 + $0xb0] sm:$0xff]   ;;  %v3935_v25 = vld [vmem:[%s4772_s1 + $0xb8] sm:$0xff]   ;;  %s4116_s14 = sshll.u32 %s4187_s9, 4  ;;  %s4117_s14 = int_to_ptr.vmem [resolvable:$false] %s4116_s14 }
  0x3a   : > { %s290_s19 = scalar_lea.vmem %s4771_s0, %s3855_s13  ;;  %v3920_v26 = vld [vmem:[%s4772_s1 + $0x40] sm:$0xff]   ;;  %v3922_v28 = vld [vmem:[%s4772_s1 + $0x48] sm:$0xff]   ;;  %v3924_v31 = vld [vmem:[%s4772_s1 + $0x50] sm:$0xff]   ;;  %s284_s13 = sand.u32 1, %s4170_s25  }
  0x3b   : > { %v292_v1 = vld [vmem:[%s290_s19] sm:$0xff]  ;;  %v293_v2 = vld [vmem:[%s290_s19 + $0x8] sm:$0xff]  ;;  %3410 = vmatpush3.bf16.msra.mxu0 %v3914_v11  ;;  %3422 = vmatpush3.bf16.msra.mxu1 %v3915_v12  ;;  %v3926_v34 = vld [vmem:[%s4772_s1 + $0x58] sm:$0xff]   ;;  %s285_s20 = scalar_lea.vmem [#allocation5], %s284_s13  ;;  %s2874_s8 = scalar_lea.sflag [#allocation4], %s284_s13 }
  0x3c   : > { %v533_v3 = vld [vmem:[%s290_s19 + $0x1] sm:$0xff]  ;;  %v294_v4 = vpack.c.bf16 %v293_v2, %v292_v1  ;;  %v534_v5 = vld [vmem:[%s290_s19 + $0x9] sm:$0xff]  ;;  %3411 = vmatprep.subr.bf16.mxu0 %v4183_v0  ;;  %3423 = vmatprep.subr.bf16.mxu1 %v4183_v0  ;;  %v3943_v38 = vld [vmem:[%s4772_s1 + $0xf8] sm:$0xff]   ;;  %s2886_s21 = sshll.u32 %s285_s20, 4  ;;  %s4118_s17 = scalar_lea.vmem %s4117_s14, 32  ;;  %s4731_s21 = int_to_ptr.vmem [resolvable:$true] %s2886_s21 }
  0x3d   : > { %v535_v6 = vpack.c.bf16 %v534_v5, %v533_v3  ;;  %v778_v7 = vld [vmem:[%s290_s19 + $0x2] sm:$0xff]  ;;  %v779_v8 = vld [vmem:[%s290_s19 + $0xa] sm:$0xff]  ;;  %v3934_v42 = vld [vmem:[%s4772_s1 + $0x98] sm:$0xff]   ;;  %s3206_s19 = sshll.u32 %s4249_s28, 4  ;;  %s4112_s28 = scalar_lea.vmem %s4731_s21, 16 }
  0x3e   : > { %313 = vrot.lane.b32.xlu0 %v294_v4, %s4185_s22  ;;  %v4336_v13 = vpack.c.bf16 %v779_v8, %v778_v7  ;;  %v3937_v30 = vld [vmem:[%s4772_s1 + $0xe0] sm:$0xff]   ;;  %v3939_v33 = vld [vmem:[%s4772_s1 + $0xe8] sm:$0xff]   ;;  %v3941_v35 = vld [vmem:[%s4772_s1 + $0xf0] sm:$0xff]   ;;  %p4113_p6 = scmp.ne.s32.totalorder %s4731_s21, %s4112_s28  ;;  %p4119_p2 = scmp.lt.s32.totalorder %s4731_s21, %s4117_s14 }
  0x3f   : > { %625 = vrot.lane.b32.xlu1 %v535_v6, %s4185_s22  ;;  %3412 = vmatpush3.bf16.msra.mxu0 %v3916_v14  ;;  %v3928_v37 = vld [vmem:[%s4772_s1 + $0x80] sm:$0xff]   ;;  %v3930_v39 = vld [vmem:[%s4772_s1 + $0x88] sm:$0xff]   ;;  %v3932_v41 = vld [vmem:[%s4772_s1 + $0x90] sm:$0xff]   ;;  %p4120_p3 = scmp.lt.s32.totalorder %s4118_s17, %s4112_s28 }
  0x40   : > { %3424 = vmatpush3.bf16.msra.mxu1 %v3917_v15  ;;  %3413 = vmatprep.subr.bf16.mxu0 %v4183_v0  ;;  %v3936_v43 = vld [vmem:[%s4772_s1 + $0xc0] sm:$0xff]   ;;  %v3938_v44 = vld [vmem:[%s4772_s1 + $0xc8] sm:$0xff]   ;;  %v3940_v45 = vld [vmem:[%s4772_s1 + $0xd0] sm:$0xff]   ;;  %p4114_p10 = pnand %p4113_p6, %p4789_p9 }
  0x41   : > { %3425 = vmatprep.subr.bf16.mxu1 %v4183_v0  ;;  %v3942_v46 = vld [vmem:[%s4772_s1 + $0xd8] sm:$0xff]   ;;  %v3944_v47 = vld [vmem:[%s4772_s1 + $0x100] sm:$0xff]   ;;  %v3945_v48 = vld [vmem:[%s4772_s1 + $0x108] sm:$0xff]   ;;  %p4121_p4 = por %p4120_p3, %p4119_p2 }
  0x42   : > { %461 = vrot.lane.b32.xlu0 %v294_v4, %s4186_s16  ;;  %v3946_v49 = vld [vmem:[%s4772_s1 + $0x110] sm:$0xff]   ;;  %v3947_v50 = vld [vmem:[%s4772_s1 + $0x118] sm:$0xff]   ;;  %v3948_v56 = vld [vmem:[#allocation2] sm:$0xff]   ;;  %p4115_p12 = pneg %p4114_p10 }
  0x43   : > { %706 = vrot.lane.b32.xlu1 %v535_v6, %s4186_s16  ;;  %3414 = vmatpush3.bf16.msra.mxu0 %v3918_v16  ;;  %v3949_v57 = vld [vmem:[#allocation2 + $0x40] sm:$0xff]   ;;  %v3950_v58 = vld [vmem:[#allocation2 + $0x8] sm:$0xff]   ;;  %v3952_v62 = vld [vmem:[#allocation2 + $0x10] sm:$0xff]  }
  0x44   : > { %3426 = vmatpush3.bf16.msra.mxu1 %v3919_v17  ;;  %3431 = vmatprep.subr.bf16.mxu0 %v4183_v0  ;;  %v3951_v59 = vld [vmem:[#allocation2 + $0x48] sm:$0xff]   ;;  %v3953_v2 = vld [vmem:[#allocation2 + $0x50] sm:$0xff]   ;;  %v3954_v3 = vld [vmem:[#allocation2 + $0x18] sm:$0xff]   ;;  %p4122_p7 = pnand %p4121_p4, %p4115_p12 }
  0x45   : > { %3443 = vmatprep.subr.bf16.mxu1 %v4183_v0  ;;  %v3956_v5 = vld [vmem:[#allocation2 + $0x20] sm:$0xff]   ;;  %v3958_v7 = vld [vmem:[#allocation2 + $0x28] sm:$0xff]   ;;  %v3960_v9 = vld [vmem:[#allocation2 + $0x30] sm:$0xff]  }
  0x46   : > { %870 = vrot.lane.b32.xlu0 %v4336_v13, %s4185_s22  ;;  %v3959_v8 = vld [vmem:[#allocation2 + $0x68] sm:$0xff]   ;;  %v3961_v10 = vld [vmem:[#allocation2 + $0x70] sm:$0xff]   ;;  %v3962_v11 = vld [vmem:[#allocation2 + $0x38] sm:$0xff]   ;;  %s4729_s22 = scalar_lea.hbm %s4778_s7, %s3206_s19 }
  0x47   : > { %951 = vrot.lane.b32.xlu1 %v4336_v13, %s4186_s16  ;;  %3428 = vmatmul.mubr.msk.bf16.vlgmr.msra.gmra.mrb[0].mxu1 %vm339_vm1, %v294_v4  ;;  %v3955_v4 = vld [vmem:[#allocation2 + $0x58] sm:$0xff]  }
  0x48   : > { %3444 = vmatpush3.bf16.msra.mxu1 %v3921_v18  ;;  %3451 = vmatprep.mubr.msk.bf16.mxu1 %vm4184_vm0, %v4183_v0  ;;  %v3963_v12 = vld [vmem:[#allocation2 + $0x78] sm:$0xff]  }
  0x49   : > { %3445 = vmatprep.subr.bf16.mxu1 %v4183_v0 }
  0x4c   : > { %3446 = vmatpush3.bf16.msra.mxu1 %v3923_v19 }
  0x4d   : > { %3447 = vmatprep.subr.bf16.mxu1 %v4183_v0 }
  0x50   : > { %3448 = vmatpush3.bf16.msra.mxu1 %v3925_v20 }
  0x51   : > { %3449 = vmatprep.subr.bf16.mxu1 %v4183_v0 }
  0x54   : > { %3450 = vmatpush3.bf16.msra.mxu1 %v3927_v21 }
  0x55   : > { %3467 = vmatprep.subr.bf16.mxu1 %v4183_v0 }
  0x57   : > { %3452 = vmatmul.mubr.msk.bf16.vlgmr.msra.gmra.mrb[4].mxu1 %vm339_vm1, %v535_v6  ;;  %v3957_v6 = vld [vmem:[#allocation2 + $0x60] sm:$0xff]  }
  0x58   : > { %3468 = vmatpush3.bf16.msra.mxu1 %v3929_v22  ;;  %3475 = vmatprep.mubr.msk.bf16.mxu1 %vm4184_vm0, %v4183_v0 }
  0x59   : > { %3469 = vmatprep.subr.bf16.mxu1 %v4183_v0 }
  0x5c   : > { %3470 = vmatpush3.bf16.msra.mxu1 %v3931_v23 }
  0x5d   : > { %3471 = vmatprep.subr.bf16.mxu1 %v4183_v0 }
  0x60   : > { %3472 = vmatpush3.bf16.msra.mxu1 %v3933_v24 }
  0x61   : > { %3473 = vmatprep.subr.bf16.mxu1 %v4183_v0 }
  0x64   : > { %3474 = vmatpush3.bf16.msra.mxu1 %v3935_v25 }
  0x65   : > { %3491 = vmatprep.subr.bf16.mxu1 %v4183_v0 }
  0xb0   : > { %v314_v27 = vpop.permute.xlu0 %313 }
  0xb1   : > { %3416 = vmatmul.mubr.msk.bf16.vlgmr.msra.gmra.mrb[0].mxu0 %vm339_vm1, %v314_v27  ;;  %v626_v29 = vpop.permute.xlu1 %625 }
  0xb2   : > { %3432 = vmatpush3.bf16.msra.mxu0 %v3920_v26  ;;  %3439 = vmatprep.mubr.msk.bf16.mxu0 %vm4184_vm0, %v4183_v0 }
  0xb3   : > { %3433 = vmatprep.subr.bf16.mxu0 %v4183_v0 }
  0xb4   : > { %v462_v36 = vpop.permute.xlu0 %461 }
  0xb5   : > { %v707_v32 = vpop.permute.xlu1 %706 }
  0xb6   : > { %3434 = vmatpush3.bf16.msra.mxu0 %v3922_v28  ;;  %3476 = vmatmul.mubr.msk.bf16.vlgmr.msra.gmra.mrb[8].mxu1 %vm339_vm1, %v707_v32 }
  0xb7   : > { %3435 = vmatprep.subr.bf16.mxu0 %v4183_v0  ;;  %3492 = vmatpush3.bf16.msra.mxu1 %v3937_v30 }
  0xb8   : > { %3493 = vmatprep.subr.bf16.mxu1 %v4183_v0  ;;  %3499 = vmatprep.mubr.msk.bf16.mxu1 %vm4184_vm0, %v4183_v0  ;;  %v871_v40 = vpop.permute.xlu0 %870 }
  0xb9   : > { %v952_v51 = vpop.permute.xlu1 %951 }
  0xba   : > { %3436 = vmatpush3.bf16.msra.mxu0 %v3924_v31 }
  0xbb   : > { %3437 = vmatprep.subr.bf16.mxu0 %v4183_v0  ;;  %3494 = vmatpush3.bf16.msra.mxu1 %v3939_v33 }
  0xbc   : > { %3495 = vmatprep.subr.bf16.mxu1 %v4183_v0 }
  0xbe   : > { %3438 = vmatpush3.bf16.msra.mxu0 %v3926_v34 }
  0xbf   : > { %3455 = vmatprep.subr.bf16.mxu0 %v4183_v0  ;;  %3496 = vmatpush3.bf16.msra.mxu1 %v3941_v35 }
  0xc0   : > { %3497 = vmatprep.subr.bf16.mxu1 %v4183_v0 }
  0xc1   : > { %3440 = vmatmul.mubr.msk.bf16.vlgmr.msra.gmra.mrb[4].mxu0 %vm339_vm1, %v462_v36 }
  0xc2   : > { %3456 = vmatpush3.bf16.msra.mxu0 %v3928_v37  ;;  %3463 = vmatprep.mubr.msk.bf16.mxu0 %vm4184_vm0, %v4183_v0 }
  0xc3   : > { %3457 = vmatprep.subr.bf16.mxu0 %v4183_v0  ;;  %3498 = vmatpush3.bf16.msra.mxu1 %v3943_v38 }
  0xc4   : > { %3515 = vmatprep.subr.bf16.mxu1 %v4183_v0 }
  0xc6   : > { %3458 = vmatpush3.bf16.msra.mxu0 %v3930_v39  ;;  %3500 = vmatmul.mubr.msk.bf16.vlgmr.msra.gmra.mrb[12].mxu1 %vm339_vm1, %v871_v40 }
  0xc7   : > { %3459 = vmatprep.subr.bf16.mxu0 %v4183_v0  ;;  %3531 = vmatprep.mubr.msk.bf16.mxu1 %vm4184_vm0, %v4183_v0 }
  0xc8   : > { %3516 = vmatpush3.bf16.msra.mxu1 %v3949_v57 }
  0xc9   : > { %3517 = vmatprep.subr.bf16.mxu1 %v4183_v0 }
  0xca   : > { %3460 = vmatpush3.bf16.msra.mxu0 %v3932_v41 }
  0xcb   : > { %3461 = vmatprep.subr.bf16.mxu0 %v4183_v0 }
  0xcc   : > { %3518 = vmatpush3.bf16.msra.mxu1 %v3951_v59 }
  0xcd   : > { %3519 = vmatprep.subr.bf16.mxu1 %v4183_v0 }
  0xce   : > { %3462 = vmatpush3.bf16.msra.mxu0 %v3934_v42 }
  0xcf   : > { %3479 = vmatprep.subr.bf16.mxu0 %v4183_v0 }
  0xd0   : > { %3520 = vmatpush3.bf16.msra.mxu1 %v3953_v2  ;;  %v3966_v2 = vld [vmem:[#allocation2 + $0xc8] sm:$0xff]  }
  0xd1   : > { %3464 = vmatmul.mubr.msk.bf16.vlgmr.msra.gmra.mrb[8].mxu0 %vm339_vm1, %v626_v29  ;;  %3521 = vmatprep.subr.bf16.mxu1 %v4183_v0 }
  0xd2   : > { %3480 = vmatpush3.bf16.msra.mxu0 %v3936_v43  ;;  %3487 = vmatprep.mubr.msk.bf16.mxu0 %vm4184_vm0, %v4183_v0 }
  0xd3   : > { %3481 = vmatprep.subr.bf16.mxu0 %v4183_v0 }
  0xd4   : > { %3522 = vmatpush3.bf16.msra.mxu1 %v3955_v4  ;;  %v3968_v4 = vld [vmem:[#allocation2 + $0xd0] sm:$0xff]  }
  0xd5   : > { %3523 = vmatprep.subr.bf16.mxu1 %v4183_v0 }
  0xd6   : > { %3482 = vmatpush3.bf16.msra.mxu0 %v3938_v44 }
  0xd7   : > { %3483 = vmatprep.subr.bf16.mxu0 %v4183_v0 }
  0xd8   : > { %3524 = vmatpush3.bf16.msra.mxu1 %v3957_v6  ;;  %v3970_v6 = vld [vmem:[#allocation2 + $0xd8] sm:$0xff]  }
  0xd9   : > { %3525 = vmatprep.subr.bf16.mxu1 %v4183_v0 }
  0xda   : > { %3484 = vmatpush3.bf16.msra.mxu0 %v3940_v45 }
  0xdb   : > { %3485 = vmatprep.subr.bf16.mxu0 %v4183_v0 }
  0xdc   : > { %3526 = vmatpush3.bf16.msra.mxu1 %v3959_v8  ;;  %v3972_v8 = vld [vmem:[#allocation2 + $0xe0] sm:$0xff]  }
  0xdd   : > { %3527 = vmatprep.subr.bf16.mxu1 %v4183_v0 }
  0xde   : > { %3486 = vmatpush3.bf16.msra.mxu0 %v3942_v46 }
  0xdf   : > { %3503 = vmatprep.subr.bf16.mxu0 %v4183_v0 }
  0xe0   : > { %3528 = vmatpush3.bf16.msra.mxu1 %v3961_v10  ;;  %v3974_v10 = vld [vmem:[#allocation2 + $0xe8] sm:$0xff]  }
  0xe1   : > { %3488 = vmatmul.mubr.msk.bf16.vlgmr.msra.gmra.mrb[12].mxu0 %vm339_vm1, %v4336_v13  ;;  %3529 = vmatprep.subr.bf16.mxu1 %v4183_v0 }
  0xe2   : > { %3504 = vmatpush3.bf16.msra.mxu0 %v3944_v47  ;;  %3511 = vmatprep.mubr.msk.bf16.mxu0 %vm4184_vm0, %v4183_v0 }
  0xe3   : > { %3505 = vmatprep.subr.bf16.mxu0 %v4183_v0 }
  0xe4   : > { %3530 = vmatpush3.bf16.msra.mxu1 %v3963_v12  ;;  %v3976_v12 = vld [vmem:[#allocation2 + $0xf0] sm:$0xff]  }
  0xe5   : > { %3555 = vmatprep.subr.bf16.mxu1 %v4183_v0 }
  0xe6   : > { %3506 = vmatpush3.bf16.msra.mxu0 %v3945_v48 }
  0xe7   : > { %3507 = vmatprep.subr.bf16.mxu0 %v4183_v0 }
  0xea   : > { %3508 = vmatpush3.bf16.msra.mxu0 %v3946_v49 }
  0xeb   : > { %3509 = vmatprep.subr.bf16.mxu0 %v4183_v0 }
  0xee   : > { %3510 = vmatpush3.bf16.msra.mxu0 %v3947_v50 }
  0xef   : > { %3535 = vmatprep.subr.bf16.mxu0 %v4183_v0 }
  0xf1   : > { %3512 = vmatmul.mubr.msk.bf16.vlgmr.msra.gmra.mrb[16].mxu0 %vm339_vm1, %v952_v51 }
  0xf2   : > { %3551 = vmatprep.mubr.msk.bf16.mxu0 %vm4184_vm0, %v4183_v0  ;;  %3536 = vmatpush3.bf16.msra.mxu0 %v3948_v56 }
  0xf3   : > { %3537 = vmatprep.subr.bf16.mxu0 %v4183_v0 }
  0xf6   : > { %3538 = vmatpush3.bf16.msra.mxu0 %v3950_v58 }
  0xf7   : > { %3539 = vmatprep.subr.bf16.mxu0 %v4183_v0 }
  0xfa   : > { %3540 = vmatpush3.bf16.msra.mxu0 %v3952_v62 }
  0xfb   : > { %3541 = vmatprep.subr.bf16.mxu0 %v4183_v0 }
  0xfe   : > { %3542 = vmatpush3.bf16.msra.mxu0 %v3954_v3  ;;  %v3967_v3 = vld [vmem:[#allocation2 + $0x88] sm:$0xff]  }
  0xff   : > { %3543 = vmatprep.subr.bf16.mxu0 %v4183_v0 }
 0x102   : > { %3544 = vmatpush3.bf16.msra.mxu0 %v3956_v5  ;;  %v3969_v5 = vld [vmem:[#allocation2 + $0x90] sm:$0xff]  }
 0x103   : > { %3545 = vmatprep.subr.bf16.mxu0 %v4183_v0 }
 0x106   : > { %3546 = vmatpush3.bf16.msra.mxu0 %v3958_v7  ;;  %v3971_v7 = vld [vmem:[#allocation2 + $0x98] sm:$0xff]  }
 0x107   : > { %3547 = vmatprep.subr.bf16.mxu0 %v4183_v0 }
 0x10a   : > { %3548 = vmatpush3.bf16.msra.mxu0 %v3960_v9  ;;  %v3973_v9 = vld [vmem:[#allocation2 + $0xa0] sm:$0xff]  }
 0x10b   : > { %3549 = vmatprep.subr.bf16.mxu0 %v4183_v0 }
 0x10e   : > { %3550 = vmatpush3.bf16.msra.mxu0 %v3962_v11  ;;  %v3975_v11 = vld [vmem:[#allocation2 + $0xa8] sm:$0xff]  }
 0x10f   : > { %3575 = vmatprep.subr.bf16.mxu0 %v4183_v0 }
 0x11a   : > { %v445_v52 = vpop.f32.mrb[0].mxu1 }
 0x11b   : > { %v3429_v53 = vpop.f32.mrb[1].mxu1 }
 0x11c   : > { %v448_v54 = vpop.f32.mrb[2].mxu1 }
 0x11d   : > { %v3430_v55 = vpop.f32.mrb[3].mxu1 }
 0x12a   : > { %v606_v60 = vpop.f32.mrb[4].mxu1 }
 0x12b   : > { %v3453_v61 = vpop.f32.mrb[5].mxu1 }
 0x12c   : > { %v609_v63 = vpop.f32.mrb[6].mxu1  ;;  %v3964_v61 = vld [vmem:[#allocation2 + $0xc0] sm:$0xff]  }
 0x12d   : > { %v3454_v1 = vpop.f32.mrb[7].mxu1 }
 0x184   : > { %v377_v13 = vpop.f32.mrb[0].mxu0 }
 0x185   : > { %v446_v14 = vadd.f32 %v445_v52, %v377_v13  ;;  %v3417_v15 = vpop.f32.mrb[1].mxu0  ;;  %v3069_v52 = vld [vmem:[%s4773_s2] ss:$0 sm:$0xff]  ;;  %v3977_v13 = vld [vmem:[#allocation2 + $0xb0] sm:$0xff]  }
 0x186   : > { %v380_v16 = vpop.f32.mrb[2].mxu0  ;;  %v3979_v15 = vld [vmem:[#allocation2 + $0xb8] sm:$0xff]  }
 0x187   : > { %v449_v17 = vadd.f32 %v448_v54, %v380_v16  ;;  %v3418_v18 = vpop.f32.mrb[3].mxu0  ;;  %v3980_v16 = vld [vmem:[#allocation2 + $0x140] sm:$0xff]  }
 0x188   : > { %v3981_v18 = vld [vmem:[#allocation2 + $0x100] sm:$0xff]  }
 0x189   : > { %v769_v19 = vpop.f32.mrb[8].mxu1 }
 0x18a   : > { %v3477_v20 = vpop.f32.mrb[9].mxu1 }
 0x18b   : > { %v772_v21 = vpop.f32.mrb[10].mxu1  ;;  %v3982_v20 = vld [vmem:[#allocation2 + $0x148] sm:$0xff]  }
 0x18c   : > { %v3478_v22 = vpop.f32.mrb[11].mxu1 }
 0x18d   : > { %v3984_v22 = vld [vmem:[#allocation2 + $0x150] sm:$0xff]  }
 0x194   : > { %v524_v23 = vpop.f32.mrb[4].mxu0 }
 0x195   : > { %v531_v24 = vadd.f32 %v524_v23, %v446_v14  ;;  %v3441_v25 = vpop.f32.mrb[5].mxu0  ;;  %v3978_v14 = vld [vmem:[#allocation2 + $0xf8] sm:$0xff]   ;;  %v3985_v23 = vld [vmem:[#allocation2 + $0x110] sm:$0xff]  }
 0x196   : > { %v527_v26 = vpop.f32.mrb[6].mxu0  ;;  %v3987_v25 = vld [vmem:[#allocation2 + $0x118] sm:$0xff]  }
 0x197   : > { %v532_v27 = vadd.f32 %v527_v26, %v449_v17  ;;  %v613_v28 = vadd.f32 %v606_v60, %v531_v24  ;;  %v3442_v29 = vpop.f32.mrb[7].mxu0  ;;  %v3986_v24 = vld [vmem:[#allocation2 + $0x158] sm:$0xff]   ;;  %v3988_v26 = vld [vmem:[#allocation2 + $0x160] sm:$0xff]  }
 0x198   : > { %v3991_v29 = vld [vmem:[#allocation2 + $0x128] sm:$0xff]  }
 0x199   : > { %v614_v30 = vadd.f32 %v609_v63, %v532_v27  ;;  %v933_v31 = vpop.f32.mrb[12].mxu1  ;;  %v3965_v63 = vld [vmem:[#allocation2 + $0x80] sm:$0xff]  }
 0x19a   : > { %v3501_v32 = vpop.f32.mrb[13].mxu1  ;;  %v3989_v27 = vld [vmem:[#allocation2 + $0x120] sm:$0xff]  }
 0x19b   : > { %v936_v33 = vpop.f32.mrb[14].mxu1  ;;  %v3994_v32 = vld [vmem:[#allocation2 + $0x178] sm:$0xff]  }
 0x19c   : > { %v3502_v34 = vpop.f32.mrb[15].mxu1 }
 0x19d   : > { %v3996_v34 = vld [vmem:[#allocation2 + $0x1c0] sm:$0xff]  }
 0x1a4   : > { %v688_v35 = vpop.f32.mrb[8].mxu0 }
 0x1a5   : > { %v695_v36 = vadd.f32 %v688_v35, %v613_v28  ;;  %v3465_v37 = vpop.f32.mrb[9].mxu0  ;;  %v3990_v28 = vld [vmem:[#allocation2 + $0x168] sm:$0xff]  }
 0x1a6   : > { %v691_v38 = vpop.f32.mrb[10].mxu0 }
 0x1a7   : > { %v696_v39 = vadd.f32 %v691_v38, %v614_v30  ;;  %v776_v40 = vadd.f32 %v769_v19, %v695_v36  ;;  %v3466_v41 = vpop.f32.mrb[11].mxu0  ;;  %v3992_v30 = vld [vmem:[#allocation2 + $0x170] sm:$0xff]   ;;  %v3997_v36 = vld [vmem:[#allocation2 + $0x180] sm:$0xff]   ;;  %v3998_v38 = vld [vmem:[#allocation2 + $0x1c8] sm:$0xff]  }
 0x1a8   : > { %v4001_v41 = vld [vmem:[#allocation2 + $0x190] sm:$0xff]  }
 0x1a9   : > { %v777_v42 = vadd.f32 %v772_v21, %v696_v39  ;;  %v3983_v21 = vld [vmem:[#allocation2 + $0x108] sm:$0xff]  }
 0x1aa   : > { %v3999_v39 = vld [vmem:[#allocation2 + $0x188] sm:$0xff]  }
 0x1b4   : > { %v851_v43 = vpop.f32.mrb[12].mxu0 }
 0x1b5   : > { %v858_v44 = vadd.f32 %v851_v43, %v776_v40  ;;  %v3489_v45 = vpop.f32.mrb[13].mxu0  ;;  %v4000_v40 = vld [vmem:[#allocation2 + $0x1d0] sm:$0xff]   ;;  %v4003_v43 = vld [vmem:[#allocation2 + $0x198] sm:$0xff]  }
 0x1b6   : > { %v854_v46 = vpop.f32.mrb[14].mxu0  ;;  %v4005_v45 = vld [vmem:[#allocation2 + $0x1a0] sm:$0xff]  }
 0x1b7   : > { %v859_v47 = vadd.f32 %v854_v46, %v777_v42  ;;  %v940_v48 = vadd.f32 %v933_v31, %v858_v44  ;;  %v3490_v49 = vpop.f32.mrb[15].mxu0  ;;  %v3993_v31 = vld [vmem:[#allocation2 + $0x130] sm:$0xff]   ;;  %v4002_v42 = vld [vmem:[#allocation2 + $0x1d8] sm:$0xff]   ;;  %v4004_v44 = vld [vmem:[#allocation2 + $0x1e0] sm:$0xff]  }
 0x1b8   : > { %v4006_v46 = vld [vmem:[#allocation2 + $0x1e8] sm:$0xff]   ;;  %v4009_v49 = vld [vmem:[#allocation2 + $0x1b0] sm:$0xff]  }
 0x1b9   : > { %v941_v50 = vadd.f32 %v936_v33, %v859_v47  ;;  %v3995_v33 = vld [vmem:[#allocation2 + $0x138] sm:$0xff]   ;;  %v4007_v47 = vld [vmem:[#allocation2 + $0x1a8] sm:$0xff]  }
 0x1c4   : > { %v1014_v51 = vpop.f32.mrb[16].mxu0 }
 0x1c5   : > { %v1021_v53 = vadd.f32 %v1014_v51, %v940_v48  ;;  %v3513_v54 = vpop.f32.mrb[17].mxu0  ;;  %v4008_v48 = vld [vmem:[#allocation2 + $0x1f0] sm:$0xff]   ;;  %v4011_v51 = vld [vmem:[#allocation2 + $0x1b8] sm:$0xff]  }
 0x1c6   : > { %v1017_v55 = vpop.f32.mrb[18].mxu0  ;;  %v4013_v54 = vld [vmem:[#allocation2 + $0x200] sm:$0xff]  }
 0x1c7   : > { %v1030_v56 = vadd.f32 %v3069_v52, %v1021_v53  ;;  %v1022_v57 = vadd.f32 %v1017_v55, %v941_v50  ;;  %v3514_v58 = vpop.f32.mrb[19].mxu0  ;;  %v4010_v50 = vld [vmem:[#allocation2 + $0x1f8] sm:$0xff]  }
 0x1c8   : > { %v4016_v58 = vld [vmem:[#allocation2 + $0x250] sm:$0xff]  }
 0x1c9   : > { %v1032_v59 = vmax.f32 %v1030_v56, 0.0  ;;  %v4517_v60 = vadd.f32 %v3069_v52, %v1022_v57  ;;  %v4012_v52 = vld [vmem:[#allocation2 + $0x240] sm:$0xff]   ;;  %v4014_v56 = vld [vmem:[#allocation2 + $0x248] sm:$0xff]  }
 0x1ca   : > { %v4015_v57 = vld [vmem:[#allocation2 + $0x208] sm:$0xff]  }
 0x1cb   : > { %v4519_v62 = vpack.c.bf16 %v1032_v59, %v1032_v59  ;;  %v4017_v59 = vld [vmem:[#allocation2 + $0x210] sm:$0xff]  }
 0x1cd   : > { %3552 = vmatmul.mubr.bf16.vlgmr.msra.gmra.mrb[20].mxu0 %v4519_v62  ;;  %v4523_v1 = vshrl.u32 %v4519_v62, 16  ;;  %v1266_v19 = vrot.slane %v4519_v62, 1  ;;  %v1482_v37 = vrot.slane %v4519_v62, 2  ;;  %v1698_v55 = vrot.slane %v4519_v62, 3  ;;  %v4019_v62 = vld [vmem:[#allocation2 + $0x218] sm:$0xff]  }
 0x1ce   : > { %3576 = vmatpush3.bf16.msra.mxu0 %v3964_v61  ;;  %3591 = vmatprep.mubr.msk.bf16.mxu0 %vm4184_vm0, %v4183_v0  ;;  %v4018_v61 = vld [vmem:[#allocation2 + $0x258] sm:$0xff]  }
 0x1cf   : > { %3532 = vmatmul.mubr.bf16.vlgmr.msra.gmra.mrb[16].mxu1 %v4523_v1  ;;  %3577 = vmatprep.subr.bf16.mxu0 %v4183_v0  ;;  %v1374_v17 = vrot.slane %v4523_v1, 1  ;;  %v1590_v35 = vrot.slane %v4523_v1, 2  ;;  %v1806_v53 = vrot.slane %v4523_v1, 3  ;;  %v4021_v1 = vld [vmem:[#allocation2 + $0x220] sm:$0xff]  }
 0x1d0   : > { %3556 = vmatpush3.bf16.msra.mxu1 %v3965_v63  ;;  %3571 = vmatprep.mubr.msk.bf16.mxu1 %vm4184_vm0, %v4183_v0  ;;  %v4020_v63 = vld [vmem:[#allocation2 + $0x260] sm:$0xff]  }
 0x1d1   : > { %3557 = vmatprep.subr.bf16.mxu1 %v4183_v0 }
 0x1d2   : > { %3578 = vmatpush3.bf16.msra.mxu0 %v3966_v2  ;;  %v4022_v2 = vld [vmem:[#allocation2 + $0x268] sm:$0xff]  }
 0x1d3   : > { %3579 = vmatprep.subr.bf16.mxu0 %v4183_v0 }
 0x1d4   : > { %3558 = vmatpush3.bf16.msra.mxu1 %v3967_v3  ;;  %v4023_v3 = vld [vmem:[#allocation2 + $0x228] sm:$0xff]  }
 0x1d5   : > { %3559 = vmatprep.subr.bf16.mxu1 %v4183_v0 }
 0x1d6   : > { %3580 = vmatpush3.bf16.msra.mxu0 %v3968_v4  ;;  %v4024_v4 = vld [vmem:[#allocation2 + $0x270] sm:$0xff]  }
 0x1d7   : > { %3581 = vmatprep.subr.bf16.mxu0 %v4183_v0 }
 0x1d8   : > { %3560 = vmatpush3.bf16.msra.mxu1 %v3969_v5  ;;  %v1033_v5 = vmax.f32 %v4517_v60, 0.0 }
 0x1d9   : > { %3561 = vmatprep.subr.bf16.mxu1 %v4183_v0 }
 0x1da   : > { %3582 = vmatpush3.bf16.msra.mxu0 %v3970_v6  ;;  %v4025_v6 = vld [vmem:[#allocation2 + $0x230] sm:$0xff]  }
 0x1db   : > { %3583 = vmatprep.subr.bf16.mxu0 %v4183_v0 }
 0x1dc   : > { %3562 = vmatpush3.bf16.msra.mxu1 %v3971_v7  ;;  %v4026_v7 = vld [vmem:[#allocation2 + $0x278] sm:$0xff]  }
 0x1dd   : > { %3563 = vmatprep.subr.bf16.mxu1 %v4183_v0 }
 0x1de   : > { %3584 = vmatpush3.bf16.msra.mxu0 %v3972_v8  ;;  %v4609_v8 = vpack.c.bf16 %v1033_v5, %v1033_v5  ;;  %v4073_v5 = vld [vmem:[#allocation2 + $0x3b0] sm:$0xff]  }
 0x1df   : > { %3585 = vmatprep.subr.bf16.mxu0 %v4183_v0 }
 0x1e0   : > { %3564 = vmatpush3.bf16.msra.mxu1 %v3973_v9  ;;  %v4027_v9 = vld [vmem:[#allocation2 + $0x238] sm:$0xff]   ;;  %v4614_v60 = vshrl.u32 %v4609_v8, 16 }
 0x1e1   : > { %3565 = vmatprep.subr.bf16.mxu1 %v4183_v0 }
 0x1e2   : > { %3586 = vmatpush3.bf16.msra.mxu0 %v3974_v10  ;;  %v4028_v10 = vld [vmem:[#allocation2 + $0x2c0] sm:$0xff]  }
 0x1e3   : > { %3587 = vmatprep.subr.bf16.mxu0 %v4183_v0 }
 0x1e4   : > { %3566 = vmatpush3.bf16.msra.mxu1 %v3975_v11  ;;  %v4029_v11 = vld [vmem:[#allocation2 + $0x280] sm:$0xff]  }
 0x1e5   : > { %3567 = vmatprep.subr.bf16.mxu1 %v4183_v0 }
 0x1e6   : > { %3588 = vmatpush3.bf16.msra.mxu0 %v3976_v12  ;;  %v4030_v12 = vld [vmem:[#allocation2 + $0x2c8] sm:$0xff]  }
 0x1e7   : > { %3589 = vmatprep.subr.bf16.mxu0 %v4183_v0 }
 0x1e8   : > { %3568 = vmatpush3.bf16.msra.mxu1 %v3977_v13  ;;  %v4031_v13 = vld [vmem:[#allocation2 + $0x288] sm:$0xff]  }
 0x1e9   : > { %3569 = vmatprep.subr.bf16.mxu1 %v4183_v0 }
 0x1ea   : > { %3590 = vmatpush3.bf16.msra.mxu0 %v3978_v14  ;;  %v4032_v14 = vld [vmem:[#allocation2 + $0x2d0] sm:$0xff]  }
 0x1eb   : > { %3615 = vmatprep.subr.bf16.mxu0 %v4183_v0 }
 0x1ec   : > { %3570 = vmatpush3.bf16.msra.mxu1 %v3979_v15  ;;  %v4033_v15 = vld [vmem:[#allocation2 + $0x290] sm:$0xff]  }
 0x1ed   : > { %3592 = vmatmul.mubr.bf16.vlgmr.msra.gmra.mrb[24].mxu0 %v1374_v17  ;;  %3595 = vmatprep.subr.bf16.mxu1 %v4183_v0  ;;  %v4035_v17 = vld [vmem:[#allocation2 + $0x298] sm:$0xff]  }
 0x1ee   : > { %3616 = vmatpush3.bf16.msra.mxu0 %v3980_v16  ;;  %3631 = vmatprep.mubr.msk.bf16.mxu0 %vm4184_vm0, %v4183_v0  ;;  %v4034_v16 = vld [vmem:[#allocation2 + $0x2d8] sm:$0xff]  }
 0x1ef   : > { %3572 = vmatmul.mubr.bf16.vlgmr.msra.gmra.mrb[20].mxu1 %v1266_v19  ;;  %3617 = vmatprep.subr.bf16.mxu0 %v4183_v0  ;;  %v4037_v19 = vld [vmem:[#allocation2 + $0x2a0] sm:$0xff]  }
 0x1f0   : > { %3596 = vmatpush3.bf16.msra.mxu1 %v3981_v18  ;;  %3611 = vmatprep.mubr.msk.bf16.mxu1 %vm4184_vm0, %v4183_v0  ;;  %v4036_v18 = vld [vmem:[#allocation2 + $0x2e0] sm:$0xff]  }
 0x1f1   : > { %3597 = vmatprep.subr.bf16.mxu1 %v4183_v0 }
 0x1f2   : > { %3618 = vmatpush3.bf16.msra.mxu0 %v3982_v20  ;;  %v4038_v20 = vld [vmem:[#allocation2 + $0x2e8] sm:$0xff]  }
 0x1f3   : > { %3619 = vmatprep.subr.bf16.mxu0 %v4183_v0 }
 0x1f4   : > { %3598 = vmatpush3.bf16.msra.mxu1 %v3983_v21  ;;  %v4039_v21 = vld [vmem:[#allocation2 + $0x2a8] sm:$0xff]  }
 0x1f5   : > { %3599 = vmatprep.subr.bf16.mxu1 %v4183_v0 }
 0x1f6   : > { %3620 = vmatpush3.bf16.msra.mxu0 %v3984_v22  ;;  %v4040_v22 = vld [vmem:[#allocation2 + $0x2f0] sm:$0xff]  }
 0x1f7   : > { %3621 = vmatprep.subr.bf16.mxu0 %v4183_v0 }
 0x1f8   : > { %3600 = vmatpush3.bf16.msra.mxu1 %v3985_v23  ;;  %v4041_v23 = vld [vmem:[#allocation2 + $0x2b0] sm:$0xff]  }
 0x1f9   : > { %3601 = vmatprep.subr.bf16.mxu1 %v4183_v0 }
 0x1fa   : > { %3622 = vmatpush3.bf16.msra.mxu0 %v3986_v24  ;;  %v4042_v24 = vld [vmem:[#allocation2 + $0x2f8] sm:$0xff]  }
 0x1fb   : > { %3623 = vmatprep.subr.bf16.mxu0 %v4183_v0 }
 0x1fc   : > { %3602 = vmatpush3.bf16.msra.mxu1 %v3987_v25  ;;  %v4043_v25 = vld [vmem:[#allocation2 + $0x2b8] sm:$0xff]  }
 0x1fd   : > { %3603 = vmatprep.subr.bf16.mxu1 %v4183_v0 }
 0x1fe   : > { %3624 = vmatpush3.bf16.msra.mxu0 %v3988_v26  ;;  %v4044_v26 = vld [vmem:[#allocation2 + $0x340] sm:$0xff]  }
 0x1ff   : > { %3625 = vmatprep.subr.bf16.mxu0 %v4183_v0 }
 0x200   : > { %3604 = vmatpush3.bf16.msra.mxu1 %v3989_v27  ;;  %v2240_v27 = vrot.slane %v4614_v60, 1 }
 0x201   : > { %3605 = vmatprep.subr.bf16.mxu1 %v4183_v0 }
 0x202   : > { %3626 = vmatpush3.bf16.msra.mxu0 %v3990_v28  ;;  %v4045_v28 = vld [vmem:[#allocation2 + $0x300] sm:$0xff]  }
 0x203   : > { %3627 = vmatprep.subr.bf16.mxu0 %v4183_v0 }
 0x204   : > { %3606 = vmatpush3.bf16.msra.mxu1 %v3991_v29  ;;  %v2132_v29 = vrot.slane %v4609_v8, 1 }
 0x205   : > { %3607 = vmatprep.subr.bf16.mxu1 %v4183_v0 }
 0x206   : > { %3628 = vmatpush3.bf16.msra.mxu0 %v3992_v30  ;;  %v4046_v30 = vld [vmem:[#allocation2 + $0x348] sm:$0xff]  }
 0x207   : > { %3629 = vmatprep.subr.bf16.mxu0 %v4183_v0 }
 0x208   : > { %3608 = vmatpush3.bf16.msra.mxu1 %v3993_v31  ;;  %v4047_v31 = vld [vmem:[#allocation2 + $0x308] sm:$0xff]  }
 0x209   : > { %3609 = vmatprep.subr.bf16.mxu1 %v4183_v0 }
 0x20a   : > { %3630 = vmatpush3.bf16.msra.mxu0 %v3994_v32  ;;  %v4048_v32 = vld [vmem:[#allocation2 + $0x350] sm:$0xff]  }
 0x20b   : > { %3655 = vmatprep.subr.bf16.mxu0 %v4183_v0 }
 0x20c   : > { %3610 = vmatpush3.bf16.msra.mxu1 %v3995_v33  ;;  %v4049_v33 = vld [vmem:[#allocation2 + $0x310] sm:$0xff]  }
 0x20d   : > { %3632 = vmatmul.mubr.bf16.vlgmr.msra.gmra.mrb[28].mxu0 %v1590_v35  ;;  %3635 = vmatprep.subr.bf16.mxu1 %v4183_v0  ;;  %v4051_v35 = vld [vmem:[#allocation2 + $0x318] sm:$0xff]  }
 0x20e   : > { %3656 = vmatpush3.bf16.msra.mxu0 %v3996_v34  ;;  %3671 = vmatprep.mubr.msk.bf16.mxu0 %vm4184_vm0, %v4183_v0  ;;  %v4050_v34 = vld [vmem:[#allocation2 + $0x358] sm:$0xff]  }
 0x20f   : > { %3612 = vmatmul.mubr.bf16.vlgmr.msra.gmra.mrb[24].mxu1 %v1482_v37  ;;  %3657 = vmatprep.subr.bf16.mxu0 %v4183_v0  ;;  %v4053_v37 = vld [vmem:[#allocation2 + $0x320] sm:$0xff]  }
 0x210   : > { %3636 = vmatpush3.bf16.msra.mxu1 %v3997_v36  ;;  %3651 = vmatprep.mubr.msk.bf16.mxu1 %vm4184_vm0, %v4183_v0  ;;  %v4052_v36 = vld [vmem:[#allocation2 + $0x360] sm:$0xff]  }
 0x211   : > { %3637 = vmatprep.subr.bf16.mxu1 %v4183_v0 }
 0x212   : > { %3658 = vmatpush3.bf16.msra.mxu0 %v3998_v38  ;;  %v4054_v38 = vld [vmem:[#allocation2 + $0x368] sm:$0xff]  }
 0x213   : > { %3659 = vmatprep.subr.bf16.mxu0 %v4183_v0 }
 0x214   : > { %3638 = vmatpush3.bf16.msra.mxu1 %v3999_v39  ;;  %v4055_v39 = vld [vmem:[#allocation2 + $0x328] sm:$0xff]  }
 0x215   : > { %3639 = vmatprep.subr.bf16.mxu1 %v4183_v0 }
 0x216   : > { %3660 = vmatpush3.bf16.msra.mxu0 %v4000_v40  ;;  %v4056_v40 = vld [vmem:[#allocation2 + $0x370] sm:$0xff]  }
 0x217   : > { %3661 = vmatprep.subr.bf16.mxu0 %v4183_v0 }
 0x218   : > { %3640 = vmatpush3.bf16.msra.mxu1 %v4001_v41  ;;  %v4057_v41 = vld [vmem:[#allocation2 + $0x330] sm:$0xff]  }
 0x219   : > { %3641 = vmatprep.subr.bf16.mxu1 %v4183_v0 }
 0x21a   : > { %3662 = vmatpush3.bf16.msra.mxu0 %v4002_v42  ;;  %v4058_v42 = vld [vmem:[#allocation2 + $0x378] sm:$0xff]  }
 0x21b   : > { %3663 = vmatprep.subr.bf16.mxu0 %v4183_v0 }
 0x21c   : > { %3642 = vmatpush3.bf16.msra.mxu1 %v4003_v43  ;;  %v4059_v43 = vld [vmem:[#allocation2 + $0x338] sm:$0xff]  }
 0x21d   : > { %3643 = vmatprep.subr.bf16.mxu1 %v4183_v0 }
 0x21e   : > { %3664 = vmatpush3.bf16.msra.mxu0 %v4004_v44  ;;  %v4060_v44 = vld [vmem:[#allocation2 + $0x3c0] sm:$0xff]  }
 0x21f   : > { %3665 = vmatprep.subr.bf16.mxu0 %v4183_v0 }
 0x220   : > { %3644 = vmatpush3.bf16.msra.mxu1 %v4005_v45  ;;  %v2456_v45 = vrot.slane %v4614_v60, 2 }
 0x221   : > { %3645 = vmatprep.subr.bf16.mxu1 %v4183_v0 }
 0x222   : > { %3666 = vmatpush3.bf16.msra.mxu0 %v4006_v46  ;;  %v4061_v46 = vld [vmem:[#allocation2 + $0x380] sm:$0xff]  }
 0x223   : > { %3667 = vmatprep.subr.bf16.mxu0 %v4183_v0 }
 0x224   : > { %3646 = vmatpush3.bf16.msra.mxu1 %v4007_v47  ;;  %v2348_v47 = vrot.slane %v4609_v8, 2 }
 0x225   : > { %3647 = vmatprep.subr.bf16.mxu1 %v4183_v0 }
 0x226   : > { %3668 = vmatpush3.bf16.msra.mxu0 %v4008_v48  ;;  %v4062_v48 = vld [vmem:[#allocation2 + $0x3c8] sm:$0xff]  }
 0x227   : > { %3669 = vmatprep.subr.bf16.mxu0 %v4183_v0 }
 0x228   : > { %3648 = vmatpush3.bf16.msra.mxu1 %v4009_v49  ;;  %v4063_v49 = vld [vmem:[#allocation2 + $0x388] sm:$0xff]  }
 0x229   : > { %3649 = vmatprep.subr.bf16.mxu1 %v4183_v0 }
 0x22a   : > { %3670 = vmatpush3.bf16.msra.mxu0 %v4010_v50  ;;  %v4064_v50 = vld [vmem:[#allocation2 + $0x3d0] sm:$0xff]  }
 0x22b   : > { %3695 = vmatprep.subr.bf16.mxu0 %v4183_v0 }
 0x22c   : > { %3650 = vmatpush3.bf16.msra.mxu1 %v4011_v51  ;;  %v4065_v51 = vld [vmem:[#allocation2 + $0x390] sm:$0xff]  }
 0x22d   : > { %3672 = vmatmul.mubr.bf16.vlgmr.msra.gmra.mrb[32].mxu0 %v1806_v53  ;;  %3675 = vmatprep.subr.bf16.mxu1 %v4183_v0  ;;  %v4067_v53 = vld [vmem:[#allocation2 + $0x398] sm:$0xff]  }
 0x22e   : > { %3696 = vmatpush3.bf16.msra.mxu0 %v4012_v52  ;;  %3711 = vmatprep.mubr.msk.bf16.mxu0 %vm4184_vm0, %v4183_v0  ;;  %v4066_v52 = vld [vmem:[#allocation2 + $0x3d8] sm:$0xff]  }
 0x22f   : > { %3652 = vmatmul.mubr.bf16.vlgmr.msra.gmra.mrb[28].mxu1 %v1698_v55  ;;  %3697 = vmatprep.subr.bf16.mxu0 %v4183_v0  ;;  %v4069_v55 = vld [vmem:[#allocation2 + $0x3a0] sm:$0xff]  }
 0x230   : > { %3676 = vmatpush3.bf16.msra.mxu1 %v4013_v54  ;;  %3691 = vmatprep.mubr.msk.bf16.mxu1 %vm4184_vm0, %v4183_v0  ;;  %v4068_v54 = vld [vmem:[#allocation2 + $0x3e0] sm:$0xff]  }
 0x231   : > { %3677 = vmatprep.subr.bf16.mxu1 %v4183_v0 }
 0x232   : > { %3698 = vmatpush3.bf16.msra.mxu0 %v4014_v56  ;;  %v4070_v56 = vld [vmem:[#allocation2 + $0x3e8] sm:$0xff]  }
 0x233   : > { %3699 = vmatprep.subr.bf16.mxu0 %v4183_v0 }
 0x234   : > { %3678 = vmatpush3.bf16.msra.mxu1 %v4015_v57 }
 0x235   : > { %3679 = vmatprep.subr.bf16.mxu1 %v4183_v0 }
 0x236   : > { %3700 = vmatpush3.bf16.msra.mxu0 %v4016_v58  ;;  %v4071_v58 = vld [vmem:[#allocation2 + $0x3a8] sm:$0xff]  }
 0x237   : > { %3701 = vmatprep.subr.bf16.mxu0 %v4183_v0 }
 0x238   : > { %3680 = vmatpush3.bf16.msra.mxu1 %v4017_v59 }
 0x239   : > { %3681 = vmatprep.subr.bf16.mxu1 %v4183_v0 }
 0x23a   : > { %3702 = vmatpush3.bf16.msra.mxu0 %v4018_v61 }
 0x23b   : > { %3703 = vmatprep.subr.bf16.mxu0 %v4183_v0 }
 0x23c   : > { %3682 = vmatpush3.bf16.msra.mxu1 %v4019_v62 }
 0x23d   : > { %3683 = vmatprep.subr.bf16.mxu1 %v4183_v0 }
 0x23e   : > { %3704 = vmatpush3.bf16.msra.mxu0 %v4020_v63  ;;  %v4072_v63 = vld [vmem:[#allocation2 + $0x3f0] sm:$0xff]  }
 0x23f   : > { %3705 = vmatprep.subr.bf16.mxu0 %v4183_v0 }
 0x240   : > { %3684 = vmatpush3.bf16.msra.mxu1 %v4021_v1 }
 0x241   : > { %3685 = vmatprep.subr.bf16.mxu1 %v4183_v0 }
 0x242   : > { %3706 = vmatpush3.bf16.msra.mxu0 %v4022_v2 }
 0x243   : > { %3707 = vmatprep.subr.bf16.mxu0 %v4183_v0 }
 0x244   : > { %3686 = vmatpush3.bf16.msra.mxu1 %v4023_v3 }
 0x245   : > { %3687 = vmatprep.subr.bf16.mxu1 %v4183_v0 }
 0x246   : > { %3708 = vmatpush3.bf16.msra.mxu0 %v4024_v4 }
 0x247   : > { %3709 = vmatprep.subr.bf16.mxu0 %v4183_v0 }
 0x248   : > { %3688 = vmatpush3.bf16.msra.mxu1 %v4025_v6 }
 0x249   : > { %3689 = vmatprep.subr.bf16.mxu1 %v4183_v0 }
 0x24a   : > { %3710 = vmatpush3.bf16.msra.mxu0 %v4026_v7  ;;  %v4074_v7 = vld [vmem:[#allocation2 + $0x3f8] sm:$0xff]  }
 0x24b   : > { %3735 = vmatprep.subr.bf16.mxu0 %v4183_v0 }
 0x24c   : > { %3690 = vmatpush3.bf16.msra.mxu1 %v4027_v9  ;;  %v4075_v9 = vld [vmem:[#allocation2 + $0x3b8] sm:$0xff]  }
 0x24d   : > { %3712 = vmatmul.mubr.bf16.vlgmr.msra.gmra.mrb[36].mxu0 %v4614_v60  ;;  %3715 = vmatprep.subr.bf16.mxu1 %v4183_v0 }
 0x24e   : > { %3736 = vmatpush3.bf16.msra.mxu0 %v4028_v10  ;;  %3751 = vmatprep.mubr.msk.bf16.mxu0 %vm4184_vm0, %v4183_v0  ;;  %v2672_v10 = vrot.slane %v4614_v60, 3 }
 0x24f   : > { %3692 = vmatmul.mubr.bf16.vlgmr.msra.gmra.mrb[32].mxu1 %v4609_v8  ;;  %3737 = vmatprep.subr.bf16.mxu0 %v4183_v0 }
 0x250   : > { %3716 = vmatpush3.bf16.msra.mxu1 %v4029_v11  ;;  %3731 = vmatprep.mubr.msk.bf16.mxu1 %vm4184_vm0, %v4183_v0  ;;  %v2564_v11 = vrot.slane %v4609_v8, 3 }
 0x251   : > { %3717 = vmatprep.subr.bf16.mxu1 %v4183_v0 }
 0x252   : > { %3738 = vmatpush3.bf16.msra.mxu0 %v4030_v12 }
 0x253   : > { %3739 = vmatprep.subr.bf16.mxu0 %v4183_v0 }
 0x254   : > { %3718 = vmatpush3.bf16.msra.mxu1 %v4031_v13 }
 0x255   : > { %3719 = vmatprep.subr.bf16.mxu1 %v4183_v0 }
 0x256   : > { %3740 = vmatpush3.bf16.msra.mxu0 %v4032_v14 }
 0x257   : > { %3741 = vmatprep.subr.bf16.mxu0 %v4183_v0 }
 0x258   : > { %3720 = vmatpush3.bf16.msra.mxu1 %v4033_v15 }
 0x259   : > { %3721 = vmatprep.subr.bf16.mxu1 %v4183_v0 }
 0x25a   : > { %3742 = vmatpush3.bf16.msra.mxu0 %v4034_v16 }
 0x25b   : > { %3743 = vmatprep.subr.bf16.mxu0 %v4183_v0 }
 0x25c   : > { %3722 = vmatpush3.bf16.msra.mxu1 %v4035_v17 }
 0x25d   : > { %3723 = vmatprep.subr.bf16.mxu1 %v4183_v0 }
 0x25e   : > { %3744 = vmatpush3.bf16.msra.mxu0 %v4036_v18 }
 0x25f   : > { %3745 = vmatprep.subr.bf16.mxu0 %v4183_v0 }
 0x260   : > { %3724 = vmatpush3.bf16.msra.mxu1 %v4037_v19 }
 0x261   : > { %3725 = vmatprep.subr.bf16.mxu1 %v4183_v0 }
 0x262   : > { %3746 = vmatpush3.bf16.msra.mxu0 %v4038_v20 }
 0x263   : > { %3747 = vmatprep.subr.bf16.mxu0 %v4183_v0 }
 0x264   : > { %3726 = vmatpush3.bf16.msra.mxu1 %v4039_v21 }
 0x265   : > { %3727 = vmatprep.subr.bf16.mxu1 %v4183_v0 }
 0x266   : > { %3748 = vmatpush3.bf16.msra.mxu0 %v4040_v22 }
 0x267   : > { %3749 = vmatprep.subr.bf16.mxu0 %v4183_v0 }
 0x268   : > { %3728 = vmatpush3.bf16.msra.mxu1 %v4041_v23 }
 0x269   : > { %3729 = vmatprep.subr.bf16.mxu1 %v4183_v0 }
 0x26a   : > { %3750 = vmatpush3.bf16.msra.mxu0 %v4042_v24 }
 0x26b   : > { %3775 = vmatprep.subr.bf16.mxu0 %v4183_v0 }
 0x26c   : > { %3730 = vmatpush3.bf16.msra.mxu1 %v4043_v25 }
 0x26d   : > { %3752 = vmatmul.mubr.bf16.vlgmr.msra.gmra.mrb[40].mxu0 %v2240_v27  ;;  %3755 = vmatprep.subr.bf16.mxu1 %v4183_v0 }
 0x26e   : > { %3776 = vmatpush3.bf16.msra.mxu0 %v4044_v26  ;;  %3791 = vmatprep.mubr.msk.bf16.mxu0 %vm4184_vm0, %v4183_v0 }
 0x26f   : > { %3732 = vmatmul.mubr.bf16.vlgmr.msra.gmra.mrb[36].mxu1 %v2132_v29  ;;  %3777 = vmatprep.subr.bf16.mxu0 %v4183_v0 }
 0x270   : > { %3756 = vmatpush3.bf16.msra.mxu1 %v4045_v28  ;;  %3771 = vmatprep.mubr.msk.bf16.mxu1 %vm4184_vm0, %v4183_v0 }
 0x271   : > { %3757 = vmatprep.subr.bf16.mxu1 %v4183_v0 }
 0x272   : > { %3778 = vmatpush3.bf16.msra.mxu0 %v4046_v30  ;;  %v4076_v30 = vld [vmem:[%s4776_s5] sm:$0xff]  }
 0x273   : > { %3779 = vmatprep.subr.bf16.mxu0 %v4183_v0 }
 0x274   : > { %3758 = vmatpush3.bf16.msra.mxu1 %v4047_v31  ;;  %v4077_v31 = vld [vmem:[%s4776_s5 + $0x8] sm:$0xff]  }
 0x275   : > { %3759 = vmatprep.subr.bf16.mxu1 %v4183_v0 }
 0x276   : > { %3780 = vmatpush3.bf16.msra.mxu0 %v4048_v32  ;;  %v4078_v32 = vld [vmem:[%s4776_s5 + $0x10] sm:$0xff]  }
 0x277   : > { %3781 = vmatprep.subr.bf16.mxu0 %v4183_v0 }
 0x278   : > { %3760 = vmatpush3.bf16.msra.mxu1 %v4049_v33  ;;  %v4079_v33 = vld [vmem:[%s4776_s5 + $0x18] sm:$0xff]  }
 0x279   : > { %3761 = vmatprep.subr.bf16.mxu1 %v4183_v0 }
 0x27a   : > { %3782 = vmatpush3.bf16.msra.mxu0 %v4050_v34  ;;  %v4080_v34 = vld [vmem:[%s4776_s5 + $0x20] sm:$0xff]  }
 0x27b   : > { %3783 = vmatprep.subr.bf16.mxu0 %v4183_v0 }
 0x27c   : > { %3762 = vmatpush3.bf16.msra.mxu1 %v4051_v35 }
 0x27d   : > { %3763 = vmatprep.subr.bf16.mxu1 %v4183_v0 }
 0x27e   : > { %3784 = vmatpush3.bf16.msra.mxu0 %v4052_v36  ;;  %v4081_v36 = vld [vmem:[%s4776_s5 + $0x28] sm:$0xff]  }
 0x27f   : > { %3785 = vmatprep.subr.bf16.mxu0 %v4183_v0 }
 0x280   : > { %3764 = vmatpush3.bf16.msra.mxu1 %v4053_v37 }
 0x281   : > { %3765 = vmatprep.subr.bf16.mxu1 %v4183_v0 }
 0x282   : > { %3786 = vmatpush3.bf16.msra.mxu0 %v4054_v38 }
 0x283   : > { %3787 = vmatprep.subr.bf16.mxu0 %v4183_v0 }
 0x284   : > { %3766 = vmatpush3.bf16.msra.mxu1 %v4055_v39 }
 0x285   : > { %3767 = vmatprep.subr.bf16.mxu1 %v4183_v0 }
 0x286   : > { %3788 = vmatpush3.bf16.msra.mxu0 %v4056_v40 }
 0x287   : > { %3789 = vmatprep.subr.bf16.mxu0 %v4183_v0 }
 0x288   : > { %3768 = vmatpush3.bf16.msra.mxu1 %v4057_v41 }
 0x289   : > { %3769 = vmatprep.subr.bf16.mxu1 %v4183_v0 }
 0x28a   : > { %3790 = vmatpush3.bf16.msra.mxu0 %v4058_v42 }
 0x28b   : > { %3815 = vmatprep.subr.bf16.mxu0 %v4183_v0 }
 0x28c   : > { %3770 = vmatpush3.bf16.msra.mxu1 %v4059_v43 }
 0x28d   : > { %3792 = vmatmul.mubr.bf16.vlgmr.msra.gmra.mrb[44].mxu0 %v2456_v45  ;;  %3795 = vmatprep.subr.bf16.mxu1 %v4183_v0 }
 0x28e   : > { %3816 = vmatpush3.bf16.msra.mxu0 %v4060_v44  ;;  %3831 = vmatprep.mubr.msk.bf16.mxu0 %vm4184_vm0, %v4183_v0  ;;  %v4082_v44 = vld [vmem:[%s4776_s5 + $0x30] sm:$0xff]  }
 0x28f   : > { %3772 = vmatmul.mubr.bf16.vlgmr.msra.gmra.mrb[40].mxu1 %v2348_v47  ;;  %3817 = vmatprep.subr.bf16.mxu0 %v4183_v0  ;;  %v4083_v47 = vld [vmem:[%s4776_s5 + $0x38] sm:$0xff]  }
 0x290   : > { %3796 = vmatpush3.bf16.msra.mxu1 %v4061_v46  ;;  %3811 = vmatprep.mubr.msk.bf16.mxu1 %vm4184_vm0, %v4183_v0 }
 0x291   : > { %3797 = vmatprep.subr.bf16.mxu1 %v4183_v0 }
 0x292   : > { %3818 = vmatpush3.bf16.msra.mxu0 %v4062_v48 }
 0x293   : > { %3819 = vmatprep.subr.bf16.mxu0 %v4183_v0 }
 0x294   : > { %3798 = vmatpush3.bf16.msra.mxu1 %v4063_v49 }
 0x295   : > { %3799 = vmatprep.subr.bf16.mxu1 %v4183_v0 }
 0x296   : > { %3820 = vmatpush3.bf16.msra.mxu0 %v4064_v50 }
 0x297   : > { %3821 = vmatprep.subr.bf16.mxu0 %v4183_v0 }
 0x298   : > { %3800 = vmatpush3.bf16.msra.mxu1 %v4065_v51 }
 0x299   : > { %3801 = vmatprep.subr.bf16.mxu1 %v4183_v0 }
 0x29a   : > { %3822 = vmatpush3.bf16.msra.mxu0 %v4066_v52 }
 0x29b   : > { %3823 = vmatprep.subr.bf16.mxu0 %v4183_v0 }
 0x29c   : > { %3802 = vmatpush3.bf16.msra.mxu1 %v4067_v53 }
 0x29d   : > { %3803 = vmatprep.subr.bf16.mxu1 %v4183_v0 }
 0x29e   : > { %3824 = vmatpush3.bf16.msra.mxu0 %v4068_v54 }
 0x29f   : > { %3825 = vmatprep.subr.bf16.mxu0 %v4183_v0 }
 0x2a0   : > { %3804 = vmatpush3.bf16.msra.mxu1 %v4069_v55  ;;  %v1242_v57 = vpop.f32.mrb[20].mxu0 }
 0x2a1   : > { %v3553_v59 = vpop.f32.mrb[21].mxu0  ;;  %3805 = vmatprep.subr.bf16.mxu1 %v4183_v0 }
 0x2a2   : > { %3826 = vmatpush3.bf16.msra.mxu0 %v4070_v56  ;;  %v1154_v61 = vpop.f32.mrb[16].mxu1  ;;  %v1245_v62 = vpop.f32.mrb[22].mxu0 }
 0x2a3   : > { %v1243_v1 = vadd.f32 %v1242_v57, %v1154_v61  ;;  %v3533_v2 = vpop.f32.mrb[17].mxu1  ;;  %v3554_v3 = vpop.f32.mrb[23].mxu0  ;;  %3827 = vmatprep.subr.bf16.mxu0 %v4183_v0 }
 0x2a4   : > { %3806 = vmatpush3.bf16.msra.mxu1 %v4071_v58  ;;  %v1157_v4 = vpop.f32.mrb[18].mxu1 }
 0x2a5   : > { %v3534_v6 = vpop.f32.mrb[19].mxu1  ;;  %3807 = vmatprep.subr.bf16.mxu1 %v4183_v0 }
 0x2a6   : > { %3828 = vmatpush3.bf16.msra.mxu0 %v4072_v63 }
 0x2a7   : > { %3829 = vmatprep.subr.bf16.mxu0 %v4183_v0 }
 0x2a8   : > { %3808 = vmatpush3.bf16.msra.mxu1 %v4073_v5 }
 0x2a9   : > { %3809 = vmatprep.subr.bf16.mxu1 %v4183_v0 }
 0x2aa   : > { %3830 = vmatpush3.bf16.msra.mxu0 %v4074_v7 }
 0x2ac   : > { %3810 = vmatpush3.bf16.msra.mxu1 %v4075_v9 }
 0x2ad   : > { %3832 = vmatmul.mubr.bf16.vlgmr.msra.gmra.mrb[48].mxu0 %v2672_v10  ;;  %3835 = vmatprep.subr.bf16.mxu1 %v4183_v0 }
 0x2af   : > { %3812 = vmatmul.mubr.bf16.vlgmr.msra.gmra.mrb[44].mxu1 %v2564_v11 }
 0x2b0   : > { %3851 = vmatprep.mubr.msk.bf16.mxu1 %vm4184_vm0, %v4183_v0  ;;  %3836 = vmatpush3.bf16.msra.mxu1 %v4076_v30 }
 0x2b1   : > { %3837 = vmatprep.subr.bf16.mxu1 %v4183_v0 }
 0x2b4   : > { %3838 = vmatpush3.bf16.msra.mxu1 %v4077_v31 }
 0x2b5   : > { %3839 = vmatprep.subr.bf16.mxu1 %v4183_v0 }
 0x2b8   : > { %3840 = vmatpush3.bf16.msra.mxu1 %v4078_v32 }
 0x2b9   : > { %3841 = vmatprep.subr.bf16.mxu1 %v4183_v0 }
 0x2bc   : > { %3842 = vmatpush3.bf16.msra.mxu1 %v4079_v33 }
 0x2bd   : > { %3843 = vmatprep.subr.bf16.mxu1 %v4183_v0 }
 0x2c0   : > { %v1458_v12 = vpop.f32.mrb[24].mxu0  ;;  %3844 = vmatpush3.bf16.msra.mxu1 %v4080_v34 }
 0x2c1   : > { %v3593_v13 = vpop.f32.mrb[25].mxu0  ;;  %3845 = vmatprep.subr.bf16.mxu1 %v4183_v0 }
 0x2c2   : > { %v1350_v14 = vpop.f32.mrb[20].mxu1  ;;  %v1461_v15 = vpop.f32.mrb[26].mxu0 }
 0x2c3   : > { %v1356_v16 = vadd.f32 %v1350_v14, %v1243_v1  ;;  %v3573_v17 = vpop.f32.mrb[21].mxu1  ;;  %v3594_v18 = vpop.f32.mrb[27].mxu0 }
 0x2c4   : > { %v1353_v19 = vpop.f32.mrb[22].mxu1  ;;  %3846 = vmatpush3.bf16.msra.mxu1 %v4081_v36 }
 0x2c5   : > { %v3574_v20 = vpop.f32.mrb[23].mxu1  ;;  %v1464_v60 = vadd.f32 %v1458_v12, %v1356_v16  ;;  %3847 = vmatprep.subr.bf16.mxu1 %v4183_v0 }
 0x2c8   : > { %3848 = vmatpush3.bf16.msra.mxu1 %v4082_v44 }
 0x2c9   : > { %3849 = vmatprep.subr.bf16.mxu1 %v4183_v0 }
 0x2cc   : > { %3850 = vmatpush3.bf16.msra.mxu1 %v4083_v47 }
 0x2e0   : > { %v1674_v21 = vpop.f32.mrb[28].mxu0 }
 0x2e1   : > { %v3633_v22 = vpop.f32.mrb[29].mxu0 }
 0x2e2   : > { %v1566_v23 = vpop.f32.mrb[24].mxu1  ;;  %v1677_v8 = vpop.f32.mrb[30].mxu0  ;;  %v2763_v22 = vld [vmem:[%s4775_s4] sm:$0x1] }
 0x2e3   : > { %v1572_v24 = vadd.f32 %v1566_v23, %v1464_v60  ;;  %v3613_v25 = vpop.f32.mrb[25].mxu1  ;;  %v3634_v26 = vpop.f32.mrb[31].mxu0 }
 0x2e4   : > { %v1569_v27 = vpop.f32.mrb[26].mxu1 }
 0x2e5   : > { %v3614_v28 = vpop.f32.mrb[27].mxu1  ;;  %v1680_v29 = vadd.f32 %v1674_v21, %v1572_v24 }
 0x2e6   : > { %v2783_v28 = vld [vmem:[%s4777_s6] sm:$0x1] }
 0x300   : > { %v1890_v35 = vpop.f32.mrb[32].mxu0 }
 0x301   : > { %v3673_v37 = vpop.f32.mrb[33].mxu0 }
 0x302   : > { %v1782_v38 = vpop.f32.mrb[28].mxu1  ;;  %v1893_v39 = vpop.f32.mrb[34].mxu0 }
 0x303   : > { %v1788_v40 = vadd.f32 %v1782_v38, %v1680_v29  ;;  %v3653_v41 = vpop.f32.mrb[29].mxu1  ;;  %v3674_v42 = vpop.f32.mrb[35].mxu0 }
 0x304   : > { %v1785_v43 = vpop.f32.mrb[30].mxu1 }
 0x305   : > { %v3654_v45 = vpop.f32.mrb[31].mxu1  ;;  %v1896_v46 = vadd.f32 %v1890_v35, %v1788_v40 }
 0x320   : > { %v2107_v48 = vpop.f32.mrb[36].mxu0 }
 0x321   : > { %v3713_v49 = vpop.f32.mrb[37].mxu0 }
 0x322   : > { %v1997_v50 = vpop.f32.mrb[32].mxu1  ;;  %v2110_v51 = vpop.f32.mrb[38].mxu0 }
 0x323   : > { %v2003_v52 = vadd.f32 %v1997_v50, %v1896_v46  ;;  %v3693_v53 = vpop.f32.mrb[33].mxu1  ;;  %v3714_v54 = vpop.f32.mrb[39].mxu0 }
 0x324   : > { %v2000_v55 = vpop.f32.mrb[34].mxu1 }
 0x325   : > { %v3694_v56 = vpop.f32.mrb[35].mxu1  ;;  %v2113_v57 = vadd.f32 %v2107_v48, %v2003_v52 }
 0x340   : > { %v2324_v58 = vpop.f32.mrb[40].mxu0 }
 0x341   : > { %v3753_v59 = vpop.f32.mrb[41].mxu0 }
 0x342   : > { %v2216_v61 = vpop.f32.mrb[36].mxu1  ;;  %v2327_v62 = vpop.f32.mrb[42].mxu0 }
 0x343   : > { %v2222_v0 = vadd.f32 %v2216_v61, %v2113_v57  ;;  %v3733_v63 = vpop.f32.mrb[37].mxu1  ;;  %v3754_v1 = vpop.f32.mrb[43].mxu0 }
 0x344   : > { %v2219_v2 = vpop.f32.mrb[38].mxu1 }
 0x345   : > { %v3734_v3 = vpop.f32.mrb[39].mxu1  ;;  %v2330_v4 = vadd.f32 %v2324_v58, %v2222_v0 }
 0x360   : > { %v2540_v5 = vpop.f32.mrb[44].mxu0 }
 0x361   : > { %v3793_v6 = vpop.f32.mrb[45].mxu0 }
 0x362   : > { %v2432_v7 = vpop.f32.mrb[40].mxu1  ;;  %v2543_v9 = vpop.f32.mrb[46].mxu0 }
 0x363   : > { %v2438_v10 = vadd.f32 %v2432_v7, %v2330_v4  ;;  %v3773_v11 = vpop.f32.mrb[41].mxu1  ;;  %v3794_v12 = vpop.f32.mrb[47].mxu0 }
 0x364   : > { %v2435_v13 = vpop.f32.mrb[42].mxu1 }
 0x365   : > { %v3774_v14 = vpop.f32.mrb[43].mxu1  ;;  %v2546_v15 = vadd.f32 %v2540_v5, %v2438_v10 }
 0x380   : > { %v2756_v16 = vpop.f32.mrb[48].mxu0 }
 0x381   : > { %v3833_v17 = vpop.f32.mrb[49].mxu0 }
 0x382   : > { %v2648_v18 = vpop.f32.mrb[44].mxu1  ;;  %v2759_v19 = vpop.f32.mrb[50].mxu0 }
 0x383   : > { %v2654_v20 = vadd.f32 %v2648_v18, %v2546_v15  ;;  %v3813_v60 = vpop.f32.mrb[45].mxu1  ;;  %v3834_v21 = vpop.f32.mrb[51].mxu0 }
 0x384   : > { %v2651_v23 = vpop.f32.mrb[46].mxu1 }
 0x385   : > { %v2762_v8 = vadd.f32 %v2756_v16, %v2654_v20  ;;  %v3814_v24 = vpop.f32.mrb[47].mxu1 }
 0x387   : > { %v2764_v25 = vadd.f32 %v2763_v22, %v2762_v8 }
 0x389   : > { %v2765_v26 = vmax.f32 %v2764_v25, 0.0 }
 0x38b   : > { %v2766_v27 = vpack.c.bf16 %v2765_v26, %v2765_v26 }
 0x38d   : > { %3852 = vmatmul.mubr.bf16.vlgmr.msra.gmra.mrb[48].mxu1 %v2766_v27 }
 0x460   : > { %v2866_v29 = vpop.f32.mrb[48].mxu1 }
 0x461   : > { %v2867_v30 = vadd.f32 %v2866_v29, %v2783_v28  ;;  %v3853_v31 = vpop.f32.mrb[49].mxu1 }
 0x462   : > { %v2869_v32 = vpop.f32.mrb[50].mxu1 }
 0x463   : > { %2872 = vst [vmem:[%s285_s20] sm:$0x1] %v2867_v30  ;;  %v3854_v33 = vpop.f32.mrb[51].mxu1 }
 0x464   : > { %4125 = shalt.err (!%p4122_p7)
}
 0x465   : > { %s4126_s16 = scalar_lea.hbm %s4729_s22, 16  ;;  %s4130_s18 = scalar_lea.hbm %s4778_s7, 32 }
 0x466   : > { %p4127_p8 = scmp.ne.s32.totalorder %s4729_s22, %s4126_s16  ;;  %p4131_p1 = scmp.lt.u32.totalorder %s4729_s22, %s4778_s7 }
 0x467   : > { %p4132_p0 = scmp.lt.u32.totalorder %s4130_s18, %s4126_s16  ;;  %p4134_p6 = scmp.lt.u32.totalorder %s4126_s16, %s4729_s22 }
 0x468   : > { %p4128_p11 = pnand %p4127_p8, %p4789_p9 }
 0x469   : > { %p4133_p5 = por %p4132_p0, %p4131_p1 }
 0x46a   : > { %p4129_p13 = pneg %p4128_p11 }
 0x46b   : > { %p4135_p10 = por %p4134_p6, %p4133_p5 }
 0x46d   : > { %p4136_p12 = pnand %p4135_p10, %p4129_p13 }
 0x46f   : > { %4139 = shalt.err (!%p4136_p12)
}
 0x470   : > { %3860 = dma.vmem_to_hbm [thread:$0]  (%p4789_p9), %s4731_s21, 16, %s4729_s22, %s2874_s8  }
 0x471 PF: > { %p3872_p2 = scmp.ge.s32.totalorder %s4178_s27, 2  ;;  %s2898_s23 = sand.u32 1, %s4166_s24  }
 0x472   : > { %p4790_p3 = scmp.ne.s32.totalorder %s4783_s12, 0  ;;  %s2899_s29 = scalar_lea.sflag [#allocation4], %s2898_s23 }
 0x474   : > { %p3867_p4 = pnand %p3872_p2, %p4790_p3 }
 0x476   : > { %4161 = dma.done.wait (!%p3867_p4), %s2899_s29, 16  }
 0x477   : > { %4163 = vsyncadd (!%p3867_p4), %s2899_s29, 4294967280  ;;  %p18_p7 = scmp.ge.s32.totalorder %s4253_s30, 4   ;;  %s4791_s24 = smov %s4170_s25 }
 0x478   : > { %s4792_s25 = smov %s4174_s26  ;;  %s4793_s26 = smov %s4264_s10 }
 0x479   : > { %s4794_s27 = smov %s4253_s30  ;;  %20 = sbr.rel (!%p18_p7) target bundleno = 4 (0x4), region = 111 }
 0x480   :  { %2903 = vsyncpa [#allocation3], 1 }
 0x481   :  { %2905 = vsyncpa [#allocation3 + $0x1], 1 }
 0x482   :  { %2906 = vsyncpa [#allocation4], 1 }
 0x483   :  { %2908 = vsyncpa [#allocation4 + $0x1], 1 }

</bundles_post_ra>
